<compile_context>
chip_gen: v6e
topology: v6e:2x2x1
jax: 0.10.0
libtpu: 0.0.40
codegen_flags: <defaults>
</compile_context>

<pallas_src>
import jax
import jax.numpy as jnp
from jax.experimental import pallas as pl
from jax.experimental.pallas import tpu as pltpu  # noqa: F401  (TPU backend)

# ----------------------- synthetic BERT config -----------------------
VOCAB = 100
TYPE_VOCAB = 2
MAX_POS = 64
HIDDEN = 32
NUM_LAYERS = 2
NUM_HEADS = 4
HEAD_DIM = HIDDEN // NUM_HEADS
INTERMEDIATE = 64
NUM_CLASSES = 3
DROPOUT = 0.1          # eval mode -> identity
LN_EPS = 1e-12


# ----------------------- fused Pallas kernel -----------------------
def _fused_bert_kernel(ids_ref, pos_ref, typ_ref, bias_ref,
                       word_emb_ref, pos_emb_ref, typ_emb_ref,
                       emb_g_ref, emb_b_ref,
                       qkv_w_ref, qkv_b_ref,
                       o_w_ref, o_b_ref,
                       ln1_g_ref, ln1_b_ref,
                       i_w_ref, i_b_ref,
                       f_w_ref, f_b_ref,
                       ln2_g_ref, ln2_b_ref,
                       pool_w_ref, pool_b_ref,
                       cls_w_ref, cls_b_ref,
                       logits_ref):
    """Embeddings + BERT encoder + pooler + classifier; everything VMEM-resident."""
    tokens = ids_ref.shape[0]
    batch = logits_ref.shape[0]
    seq = tokens // batch
    num_layers = qkv_w_ref.shape[0]
    scale = 1.0 / (HEAD_DIM ** 0.5)

    def layer_norm(x, g, b):
        mean = jnp.mean(x, axis=-1, keepdims=True)
        var = jnp.mean((x - mean) ** 2, axis=-1, keepdims=True)
        return (x - mean) * jax.lax.rsqrt(var + LN_EPS) * g + b

    # ---- embeddings as one-hot @ table (MXU-friendly gather, no XLA gathers) ----
    ids = ids_ref[...]                                                 # (T, 1) i32
    pid = pos_ref[...]                                                 # (T, 1) i32
    tid = typ_ref[...]                                                 # (T, 1) i32
    word_oh = (ids == jax.lax.broadcasted_iota(
        jnp.int32, (tokens, VOCAB), 1)).astype(jnp.float32)
    pos_oh = (pid == jax.lax.broadcasted_iota(
        jnp.int32, (tokens, MAX_POS), 1)).astype(jnp.float32)
    typ_oh = (tid == jax.lax.broadcasted_iota(
        jnp.int32, (tokens, TYPE_VOCAB), 1)).astype(jnp.float32)
    emb = (jnp.dot(word_oh, word_emb_ref[...], preferred_element_type=jnp.float32)
           + jnp.dot(pos_oh, pos_emb_ref[...], preferred_element_type=jnp.float32)
           + jnp.dot(typ_oh, typ_emb_ref[...], preferred_element_type=jnp.float32))

    # Embedding LayerNorm.
    x = layer_norm(emb, emb_g_ref[...], emb_b_ref[...])               # (T, H)

    # Additive attention bias (block-diagonal batch mask fused with the HF-style
    # key padding mask: 0 keep / -10000 drop); loaded once, reused by all layers.
    bias = bias_ref[...]                                              # (T, T)

    for l in range(num_layers):
        # ---- fused QKV projection: one matmul for all heads ----
        qkv = jnp.dot(x, qkv_w_ref[l], preferred_element_type=jnp.float32)
        qkv = qkv + qkv_b_ref[l]                                      # (T, 3H)
        q_all = qkv[:, 0 * HIDDEN:1 * HIDDEN]
        k_all = qkv[:, 1 * HIDDEN:2 * HIDDEN]
        v_all = qkv[:, 2 * HIDDEN:3 * HIDDEN]

        ow = o_w_ref[l]                                               # (H, H)

        # ---- self-attention: all tokens at once per head, masked ----
        attn = None
        for h in range(NUM_HEADS):
            c0 = h * HEAD_DIM
            q = q_all[:, c0:c0 + HEAD_DIM]                            # (T, D)
            k = k_all[:, c0:c0 + HEAD_DIM]                            # (T, D)
            v = v_all[:, c0:c0 + HEAD_DIM]                            # (T, D)
            s = jax.lax.dot_general(
                q, k, dimension_numbers=(((1,), (1,)), ((), ())),
                preferred_element_type=jnp.float32) * scale + bias    # (T, T)
            s = s - jnp.max(s, axis=-1, keepdims=True)
            e = jnp.exp(s)
            p = e * pl.reciprocal(jnp.sum(e, axis=-1, keepdims=True),
                                  approx=True)
            ctx_h = jnp.dot(p, v, preferred_element_type=jnp.float32)  # (T, D)
            # Per-head slice of the output projection; summing over heads is
            # mathematically identical to concat(heads) @ W_o (no in-kernel concat).
            part = jnp.dot(ctx_h, ow[c0:c0 + HEAD_DIM, :],
                           preferred_element_type=jnp.float32)        # (T, H)
            attn = part if attn is None else attn + part
        attn = attn + o_b_ref[l]

        # ---- residual + LN ----
        x = layer_norm(x + attn, ln1_g_ref[l], ln1_b_ref[l])

        # ---- FFN (gelu) + residual + LN ----
        # TODO(synk): HF BERT default GELU is the exact erf form; tanh approx used.
        ffn = jnp.dot(x, i_w_ref[l], preferred_element_type=jnp.float32)
        ffn = jax.nn.gelu(ffn + i_b_ref[l], approximate=True)
        ffn = jnp.dot(ffn, f_w_ref[l], preferred_element_type=jnp.float32)
        ffn = ffn + f_b_ref[l]
        x = layer_norm(x + ffn, ln2_g_ref[l], ln2_b_ref[l])

    # ---- pooler (dense + tanh) and classifier epilogue, in-VMEM ----
    pooled = jnp.tanh(
        jnp.dot(x, pool_w_ref[...], preferred_element_type=jnp.float32)
        + pool_b_ref[...])                                            # (T, H)
    logits_all = jnp.dot(pooled, cls_w_ref[...],
                         preferred_element_type=jnp.float32)
    logits_all = logits_all + cls_b_ref[...]                          # (T, C)

    # Pick the CLS (first token of each sequence) rows.
    for b in range(batch):
        logits_ref[b:b + 1, :] = logits_all[b * seq:b * seq + 1, :]
    # self.dropout(out): identity in eval mode.
    # TODO(synk): training-mode dropout (p=0.1) not applied; eval semantics used.


# ----------------------- parameter init (deterministic, stacked) ---------------
def init_params(key):
    def dense(k, fan_in, fan_out):
        k1, k2 = jax.random.split(k)
        w = jax.random.normal(k1, (fan_in, fan_out), jnp.float32) * 0.02
        b = jax.random.normal(k2, (fan_out,), jnp.float32) * 0.02
        return w, b

    keys = jax.random.split(key, 8 + NUM_LAYERS)
    params = {
        "word_emb": jax.random.normal(keys[0], (VOCAB, HIDDEN), jnp.float32) * 0.02,
        "pos_emb": jax.random.normal(keys[1], (MAX_POS, HIDDEN), jnp.float32) * 0.02,
        "type_emb": jax.random.normal(keys[2], (TYPE_VOCAB, HIDDEN), jnp.float32) * 0.02,
        "emb_ln_g": jnp.ones((1, HIDDEN), jnp.float32),
        "emb_ln_b": jnp.zeros((1, HIDDEN), jnp.float32),
    }
    pw, pb = dense(keys[3], HIDDEN, HIDDEN)
    params["pool_w"], params["pool_b"] = pw, pb.reshape(1, HIDDEN)
    cw, cb = dense(keys[4], HIDDEN, NUM_CLASSES)
    params["cls_w"], params["cls_b"] = cw, cb.reshape(1, NUM_CLASSES)

    qkv_w, qkv_b, o_w, o_b, i_w, i_b, f_w, f_b = ([] for _ in range(8))
    for li in range(NUM_LAYERS):
        lk = jax.random.split(keys[8 + li], 6)
        qw, qb = dense(lk[0], HIDDEN, HIDDEN)
        kw, kb = dense(lk[1], HIDDEN, HIDDEN)
        vw, vb = dense(lk[2], HIDDEN, HIDDEN)
        qkv_w.append(jnp.concatenate([qw, kw, vw], axis=1))          # (H, 3H)
        qkv_b.append(jnp.concatenate([qb, kb, vb]).reshape(1, 3 * HIDDEN))
        ow_, ob_ = dense(lk[3], HIDDEN, HIDDEN)
        o_w.append(ow_); o_b.append(ob_.reshape(1, HIDDEN))
        iw_, ib_ = dense(lk[4], HIDDEN, INTERMEDIATE)
        i_w.append(iw_); i_b.append(ib_.reshape(1, INTERMEDIATE))
        fw_, fb_ = dense(lk[5], INTERMEDIATE, HIDDEN)
        f_w.append(fw_); f_b.append(fb_.reshape(1, HIDDEN))

    params["qkv_w"] = jnp.stack(qkv_w); params["qkv_b"] = jnp.stack(qkv_b)
    params["o_w"] = jnp.stack(o_w);     params["o_b"] = jnp.stack(o_b)
    params["i_w"] = jnp.stack(i_w);     params["i_b"] = jnp.stack(i_b)
    params["f_w"] = jnp.stack(f_w);     params["f_b"] = jnp.stack(f_b)
    params["ln1_g"] = jnp.ones((NUM_LAYERS, 1, HIDDEN), jnp.float32)
    params["ln1_b"] = jnp.zeros((NUM_LAYERS, 1, HIDDEN), jnp.float32)
    params["ln2_g"] = jnp.ones((NUM_LAYERS, 1, HIDDEN), jnp.float32)
    params["ln2_b"] = jnp.zeros((NUM_LAYERS, 1, HIDDEN), jnp.float32)
    return params


# ----------------------- forward pass (one pallas_call) -----------------------
def bert_linear_sa_forward(params, input_ids, attention_mask,
                           token_type_ids=None, position_ids=None):
    bsz, seq = input_ids.shape
    if token_type_ids is None:
        token_type_ids = jnp.zeros_like(input_ids)
    if position_ids is None:
        position_ids = jnp.broadcast_to(
            jnp.arange(seq, dtype=jnp.int32)[None, :], (bsz, seq))

    tokens = bsz * seq
    ids = input_ids.reshape(tokens, 1).astype(jnp.int32)
    pids = position_ids.reshape(tokens, 1).astype(jnp.int32)
    tids = token_type_ids.reshape(tokens, 1).astype(jnp.int32)

    # (T, T) additive bias: 0 where (same batch AND key kept), else -10000.
    # `same` only depends on static shapes -> constant-folded by XLA; the
    # runtime part is a single tiny fused elementwise op.
    keep = attention_mask.astype(jnp.float32).reshape(-1)             # (T,)
    tok_batch = jnp.arange(tokens, dtype=jnp.int32) // seq
    same = (tok_batch[:, None] == tok_batch[None, :]).astype(jnp.float32)
    attn_bias = (1.0 - same * keep[None, :]) * -10000.0               # (T, T)

    logits = pl.pallas_call(
        _fused_bert_kernel,
        out_shape=jax.ShapeDtypeStruct((bsz, NUM_CLASSES), jnp.float32),
    )(
        ids, pids, tids, attn_bias,
        params["word_emb"], params["pos_emb"], params["type_emb"],
        params["emb_ln_g"], params["emb_ln_b"],
        params["qkv_w"], params["qkv_b"],
        params["o_w"], params["o_b"],
        params["ln1_g"], params["ln1_b"],
        params["i_w"], params["i_b"],
        params["f_w"], params["f_b"],
        params["ln2_g"], params["ln2_b"],
        params["pool_w"], params["pool_b"],
        params["cls_w"], params["cls_b"],
    )
    return logits


# ----------------------- pure-JAX reference (correctness check) ----------------
def bert_linear_sa_reference(params, input_ids, attention_mask,
                             token_type_ids=None, position_ids=None):
    bsz, seq = input_ids.shape
    if token_type_ids is None:
        token_type_ids = jnp.zeros_like(input_ids)
    if position_ids is None:
        position_ids = jnp.broadcast_to(
            jnp.arange(seq, dtype=jnp.int32)[None, :], (bsz, seq))

    def ln(x, g, b):
        mean = jnp.mean(x, -1, keepdims=True)
        var = jnp.mean((x - mean) ** 2, -1, keepdims=True)
        return (x - mean) * jax.lax.rsqrt(var + LN_EPS) * g + b

    emb = (params["word_emb"][input_ids] + params["pos_emb"][position_ids]
           + params["type_emb"][token_type_ids])
    x = ln(emb.reshape(bsz * seq, HIDDEN), params["emb_ln_g"], params["emb_ln_b"])
    bias = (1.0 - attention_mask.astype(jnp.float32)) * -10000.0      # (B, S)

    for l in range(NUM_LAYERS):
        qkv = x @ params["qkv_w"][l] + params["qkv_b"][l]
        q, k, v = jnp.split(qkv, 3, axis=-1)

        def heads(t):
            return t.reshape(bsz, seq, NUM_HEADS, HEAD_DIM).transpose(0, 2, 1, 3)

        q, k, v = heads(q), heads(k), heads(v)
        s = jnp.einsum("bhqd,bhkd->bhqk", q, k) / (HEAD_DIM ** 0.5)
        s = s + bias[:, None, None, :]
        p = jax.nn.softmax(s, axis=-1)
        ctx = jnp.einsum("bhqk,bhkd->bhqd", p, v)
        ctx = ctx.transpose(0, 2, 1, 3).reshape(bsz * seq, HIDDEN)
        attn = ctx @ params["o_w"][l] + params["o_b"][l]
        x = ln(x + attn, params["ln1_g"][l], params["ln1_b"][l])
        ffn = jax.nn.gelu(x @ params["i_w"][l] + params["i_b"][l], approximate=True)
        ffn = ffn @ params["f_w"][l] + params["f_b"][l]
        x = ln(x + ffn, params["ln2_g"][l], params["ln2_b"][l])

    cls = x.reshape(bsz, seq, HIDDEN)[:, 0, :]
    pooled = jnp.tanh(cls @ params["pool_w"] + params["pool_b"])
    return pooled @ params["cls_w"] + params["cls_b"]


# ----------------------- main -----------------------
if __name__ == "__main__":
    B, S = 2, 8
    key = jax.random.PRNGKey(0)
    kid, _ = jax.random.split(key)
    input_ids = jax.random.randint(kid, (B, S), 0, VOCAB, dtype=jnp.int32)
    attention_mask = jnp.ones((B, S), jnp.int32).at[1, 6:].set(0)  # pad tail of row 1

    params = init_params(jax.random.PRNGKey(42))

    fwd = jax.jit(bert_linear_sa_forward)   # glue + pallas_call in one executable
    logits = jax.block_until_ready(fwd(params, input_ids, attention_mask))
    assert logits.shape == (B, NUM_CLASSES) and logits.dtype == jnp.float32

    ref = jax.block_until_ready(
        bert_linear_sa_reference(params, input_ids, attention_mask))
    assert jnp.allclose(logits, ref, atol=2e-2, rtol=2e-2), (logits, ref)

    print("KERNEL_OK")
</pallas_src>

<mosaic_0001>
module attributes {stable_mosaic.version = 11 : i64} {
  func.func @_fused_bert_kernel(%arg0: memref<16x1xi32, #tpu.memory_space<vmem>>, %arg1: memref<16x1xi32, #tpu.memory_space<vmem>>, %arg2: memref<16x1xi32, #tpu.memory_space<vmem>>, %arg3: memref<16x16xf32, #tpu.memory_space<vmem>>, %arg4: memref<100x32xf32, #tpu.memory_space<vmem>>, %arg5: memref<64x32xf32, #tpu.memory_space<vmem>>, %arg6: memref<2x32xf32, #tpu.memory_space<vmem>>, %arg7: memref<1x32xf32, #tpu.memory_space<vmem>>, %arg8: memref<1x32xf32, #tpu.memory_space<vmem>>, %arg9: memref<2x32x96xf32, #tpu.memory_space<vmem>>, %arg10: memref<2x1x96xf32, #tpu.memory_space<vmem>>, %arg11: memref<2x32x32xf32, #tpu.memory_space<vmem>>, %arg12: memref<2x1x32xf32, #tpu.memory_space<vmem>>, %arg13: memref<2x1x32xf32, #tpu.memory_space<vmem>>, %arg14: memref<2x1x32xf32, #tpu.memory_space<vmem>>, %arg15: memref<2x32x64xf32, #tpu.memory_space<vmem>>, %arg16: memref<2x1x64xf32, #tpu.memory_space<vmem>>, %arg17: memref<2x64x32xf32, #tpu.memory_space<vmem>>, %arg18: memref<2x1x32xf32, #tpu.memory_space<vmem>>, %arg19: memref<2x1x32xf32, #tpu.memory_space<vmem>>, %arg20: memref<2x1x32xf32, #tpu.memory_space<vmem>>, %arg21: memref<32x32xf32, #tpu.memory_space<vmem>>, %arg22: memref<1x32xf32, #tpu.memory_space<vmem>>, %arg23: memref<32x3xf32, #tpu.memory_space<vmem>>, %arg24: memref<1x3xf32, #tpu.memory_space<vmem>>, %arg25: memref<2x3xf32, #tpu.memory_space<vmem>>) attributes {dimension_semantics = [], scalar_prefetch = 0 : i64, scratch_operands = 0 : i64, tpu.core_type = #tpu.core_type<tc>} {
    %c0 = arith.constant 0 : index
    %c0_0 = arith.constant 0 : index
    %0 = vector.load %arg0[%c0, %c0_0] : memref<16x1xi32, #tpu.memory_space<vmem>>, vector<16x1xi32>
    %c0_1 = arith.constant 0 : index
    %c0_2 = arith.constant 0 : index
    %1 = vector.load %arg1[%c0_1, %c0_2] : memref<16x1xi32, #tpu.memory_space<vmem>>, vector<16x1xi32>
    %c0_3 = arith.constant 0 : index
    %c0_4 = arith.constant 0 : index
    %2 = vector.load %arg2[%c0_3, %c0_4] : memref<16x1xi32, #tpu.memory_space<vmem>>, vector<16x1xi32>
    %3 = tpu.iota {dimensions = array<i32: 1>} : vector<16x100xi32>
    %4 = vector.broadcast %0 : vector<16x1xi32> to vector<16x100xi32>
    %5 = arith.cmpi eq, %4, %3 : vector<16x100xi32>
    %6 = arith.extui %5 : vector<16x100xi1> to vector<16x100xi32>
    %7 = arith.sitofp %6 : vector<16x100xi32> to vector<16x100xf32>
    %8 = tpu.iota {dimensions = array<i32: 1>} : vector<16x64xi32>
    %9 = vector.broadcast %1 : vector<16x1xi32> to vector<16x64xi32>
    %10 = arith.cmpi eq, %9, %8 : vector<16x64xi32>
    %11 = arith.extui %10 : vector<16x64xi1> to vector<16x64xi32>
    %12 = arith.sitofp %11 : vector<16x64xi32> to vector<16x64xf32>
    %13 = tpu.iota {dimensions = array<i32: 1>} : vector<16x2xi32>
    %14 = vector.broadcast %2 : vector<16x1xi32> to vector<16x2xi32>
    %15 = arith.cmpi eq, %14, %13 : vector<16x2xi32>
    %16 = arith.extui %15 : vector<16x2xi1> to vector<16x2xi32>
    %17 = arith.sitofp %16 : vector<16x2xi32> to vector<16x2xf32>
    %c0_5 = arith.constant 0 : index
    %c0_6 = arith.constant 0 : index
    %18 = vector.load %arg4[%c0_5, %c0_6] : memref<100x32xf32, #tpu.memory_space<vmem>>, vector<100x32xf32>
    %cst = arith.constant dense<0.000000e+00> : vector<16x32xf32>
    %19 = tpu.matmul %7, %18, %cst {dimension_numbers = #tpu.dot_dimension_numbers<[1], [0], [0], [1], [0, 0, 1, 1], [], []>} : vector<16x100xf32>, vector<100x32xf32>, vector<16x32xf32> -> vector<16x32xf32>
    %c0_7 = arith.constant 0 : index
    %c0_8 = arith.constant 0 : index
    %20 = vector.load %arg5[%c0_7, %c0_8] : memref<64x32xf32, #tpu.memory_space<vmem>>, vector<64x32xf32>
    %cst_9 = arith.constant dense<0.000000e+00> : vector<16x32xf32>
    %21 = tpu.matmul %12, %20, %cst_9 {dimension_numbers = #tpu.dot_dimension_numbers<[1], [0], [0], [1], [0, 0, 1, 1], [], []>} : vector<16x64xf32>, vector<64x32xf32>, vector<16x32xf32> -> vector<16x32xf32>
    %22 = arith.addf %19, %21 : vector<16x32xf32>
    %c0_10 = arith.constant 0 : index
    %c0_11 = arith.constant 0 : index
    %23 = vector.load %arg6[%c0_10, %c0_11] : memref<2x32xf32, #tpu.memory_space<vmem>>, vector<2x32xf32>
    %cst_12 = arith.constant dense<0.000000e+00> : vector<16x32xf32>
    %24 = tpu.matmul %17, %23, %cst_12 {dimension_numbers = #tpu.dot_dimension_numbers<[1], [0], [0], [1], [0, 0, 1, 1], [], []>} : vector<16x2xf32>, vector<2x32xf32>, vector<16x32xf32> -> vector<16x32xf32>
    %25 = arith.addf %22, %24 : vector<16x32xf32>
    %c0_13 = arith.constant 0 : index
    %c0_14 = arith.constant 0 : index
    %26 = vector.load %arg7[%c0_13, %c0_14] : memref<1x32xf32, #tpu.memory_space<vmem>>, vector<1x32xf32>
    %c0_15 = arith.constant 0 : index
    %c0_16 = arith.constant 0 : index
    %27 = vector.load %arg8[%c0_15, %c0_16] : memref<1x32xf32, #tpu.memory_space<vmem>>, vector<1x32xf32>
    %cst_17 = arith.constant dense<0.000000e+00> : vector<16xf32>
    %28 = vector.multi_reduction <add>, %25, %cst_17 [1] : vector<16x32xf32> to vector<16xf32>
    %29 = vector.shape_cast %28 : vector<16xf32> to vector<16x1xf32>
    %cst_18 = arith.constant 3.200000e+01 : f32
    %30 = vector.broadcast %cst_18 : f32 to vector<16x1xf32>
    %31 = arith.divf %29, %30 : vector<16x1xf32>
    %32 = vector.broadcast %31 : vector<16x1xf32> to vector<16x32xf32>
    %33 = arith.subf %25, %32 : vector<16x32xf32>
    %34 = arith.mulf %33, %33 : vector<16x32xf32>
    %cst_19 = arith.constant dense<0.000000e+00> : vector<16xf32>
    %35 = vector.multi_reduction <add>, %34, %cst_19 [1] : vector<16x32xf32> to vector<16xf32>
    %36 = vector.shape_cast %35 : vector<16xf32> to vector<16x1xf32>
    %cst_20 = arith.constant 3.200000e+01 : f32
    %37 = vector.broadcast %cst_20 : f32 to vector<16x1xf32>
    %38 = arith.divf %36, %37 : vector<16x1xf32>
    %39 = vector.broadcast %31 : vector<16x1xf32> to vector<16x32xf32>
    %40 = arith.subf %25, %39 : vector<16x32xf32>
    %cst_21 = arith.constant 9.99999996E-13 : f32
    %41 = vector.broadcast %cst_21 : f32 to vector<16x1xf32>
    %42 = arith.addf %38, %41 : vector<16x1xf32>
    %43 = math.rsqrt %42 : vector<16x1xf32>
    %44 = vector.broadcast %43 : vector<16x1xf32> to vector<16x32xf32>
    %45 = arith.mulf %40, %44 : vector<16x32xf32>
    %46 = vector.broadcast %26 : vector<1x32xf32> to vector<16x32xf32>
    %47 = arith.mulf %45, %46 : vector<16x32xf32>
    %48 = vector.broadcast %27 : vector<1x32xf32> to vector<16x32xf32>
    %49 = arith.addf %47, %48 : vector<16x32xf32>
    %c0_22 = arith.constant 0 : index
    %c0_23 = arith.constant 0 : index
    %50 = vector.load %arg3[%c0_22, %c0_23] : memref<16x16xf32, #tpu.memory_space<vmem>>, vector<16x16xf32>
    %c0_24 = arith.constant 0 : index
    %c0_25 = arith.constant 0 : index
    %c0_26 = arith.constant 0 : index
    %51 = vector.load %arg9[%c0_24, %c0_25, %c0_26] : memref<2x32x96xf32, #tpu.memory_space<vmem>>, vector<1x32x96xf32>
    %52 = vector.shape_cast %51 : vector<1x32x96xf32> to vector<32x96xf32>
    %cst_27 = arith.constant dense<0.000000e+00> : vector<16x96xf32>
    %53 = tpu.matmul %49, %52, %cst_27 {dimension_numbers = #tpu.dot_dimension_numbers<[1], [0], [0], [1], [0, 0, 1, 1], [], []>} : vector<16x32xf32>, vector<32x96xf32>, vector<16x96xf32> -> vector<16x96xf32>
    %c0_28 = arith.constant 0 : index
    %c0_29 = arith.constant 0 : index
    %c0_30 = arith.constant 0 : index
    %54 = vector.load %arg10[%c0_28, %c0_29, %c0_30] : memref<2x1x96xf32, #tpu.memory_space<vmem>>, vector<1x1x96xf32>
    %55 = vector.shape_cast %54 : vector<1x1x96xf32> to vector<1x96xf32>
    %56 = vector.broadcast %55 : vector<1x96xf32> to vector<16x96xf32>
    %57 = arith.addf %53, %56 : vector<16x96xf32>
    %58 = vector.extract_strided_slice %57 {offsets = [0, 0], sizes = [16, 32], strides = [1, 1]} : vector<16x96xf32> to vector<16x32xf32>
    %59 = vector.extract_strided_slice %57 {offsets = [0, 32], sizes = [16, 32], strides = [1, 1]} : vector<16x96xf32> to vector<16x32xf32>
    %60 = vector.extract_strided_slice %57 {offsets = [0, 64], sizes = [16, 32], strides = [1, 1]} : vector<16x96xf32> to vector<16x32xf32>
    %c0_31 = arith.constant 0 : index
    %c0_32 = arith.constant 0 : index
    %c0_33 = arith.constant 0 : index
    %61 = vector.load %arg11[%c0_31, %c0_32, %c0_33] : memref<2x32x32xf32, #tpu.memory_space<vmem>>, vector<1x32x32xf32>
    %62 = vector.shape_cast %61 : vector<1x32x32xf32> to vector<32x32xf32>
    %63 = vector.extract_strided_slice %58 {offsets = [0, 0], sizes = [16, 8], strides = [1, 1]} : vector<16x32xf32> to vector<16x8xf32>
    %64 = vector.extract_strided_slice %59 {offsets = [0, 0], sizes = [16, 8], strides = [1, 1]} : vector<16x32xf32> to vector<16x8xf32>
    %65 = vector.extract_strided_slice %60 {offsets = [0, 0], sizes = [16, 8], strides = [1, 1]} : vector<16x32xf32> to vector<16x8xf32>
    %cst_34 = arith.constant dense<0.000000e+00> : vector<16x16xf32>
    %66 = tpu.matmul %63, %64, %cst_34 {dimension_numbers = #tpu.dot_dimension_numbers<[1], [1], [0], [0], [0, 0, 1, 0], [], []>} : vector<16x8xf32>, vector<16x8xf32>, vector<16x16xf32> -> vector<16x16xf32>
    %cst_35 = arith.constant 0.353553385 : f32
    %67 = vector.broadcast %cst_35 : f32 to vector<16x16xf32>
    %68 = arith.mulf %66, %67 : vector<16x16xf32>
    %69 = arith.addf %68, %50 : vector<16x16xf32>
    %cst_36 = arith.constant dense<0xFF800000> : vector<16xf32>
    %70 = vector.multi_reduction <maximumf>, %69, %cst_36 [1] : vector<16x16xf32> to vector<16xf32>
    %71 = vector.shape_cast %70 : vector<16xf32> to vector<16x1xf32>
    %72 = vector.broadcast %71 : vector<16x1xf32> to vector<16x16xf32>
    %73 = arith.subf %69, %72 : vector<16x16xf32>
    %74 = math.exp %73 : vector<16x16xf32>
    %cst_37 = arith.constant dense<0.000000e+00> : vector<16xf32>
    %75 = vector.multi_reduction <add>, %74, %cst_37 [1] : vector<16x16xf32> to vector<16xf32>
    %76 = vector.shape_cast %75 : vector<16xf32> to vector<16x1xf32>
    %77 = tpu.reciprocal %76 {approx = true} : vector<16x1xf32> -> vector<16x1xf32>
    %78 = vector.broadcast %77 : vector<16x1xf32> to vector<16x16xf32>
    %79 = arith.mulf %74, %78 : vector<16x16xf32>
    %cst_38 = arith.constant dense<0.000000e+00> : vector<16x8xf32>
    %80 = tpu.matmul %79, %65, %cst_38 {dimension_numbers = #tpu.dot_dimension_numbers<[1], [0], [0], [1], [0, 0, 1, 1], [], []>} : vector<16x16xf32>, vector<16x8xf32>, vector<16x8xf32> -> vector<16x8xf32>
    %81 = vector.extract_strided_slice %62 {offsets = [0, 0], sizes = [8, 32], strides = [1, 1]} : vector<32x32xf32> to vector<8x32xf32>
    %cst_39 = arith.constant dense<0.000000e+00> : vector<16x32xf32>
    %82 = tpu.matmul %80, %81, %cst_39 {dimension_numbers = #tpu.dot_dimension_numbers<[1], [0], [0], [1], [0, 0, 1, 1], [], []>} : vector<16x8xf32>, vector<8x32xf32>, vector<16x32xf32> -> vector<16x32xf32>
    %83 = vector.extract_strided_slice %58 {offsets = [0, 8], sizes = [16, 8], strides = [1, 1]} : vector<16x32xf32> to vector<16x8xf32>
    %84 = vector.extract_strided_slice %59 {offsets = [0, 8], sizes = [16, 8], strides = [1, 1]} : vector<16x32xf32> to vector<16x8xf32>
    %85 = vector.extract_strided_slice %60 {offsets = [0, 8], sizes = [16, 8], strides = [1, 1]} : vector<16x32xf32> to vector<16x8xf32>
    %cst_40 = arith.constant dense<0.000000e+00> : vector<16x16xf32>
    %86 = tpu.matmul %83, %84, %cst_40 {dimension_numbers = #tpu.dot_dimension_numbers<[1], [1], [0], [0], [0, 0, 1, 0], [], []>} : vector<16x8xf32>, vector<16x8xf32>, vector<16x16xf32> -> vector<16x16xf32>
    %cst_41 = arith.constant 0.353553385 : f32
    %87 = vector.broadcast %cst_41 : f32 to vector<16x16xf32>
    %88 = arith.mulf %86, %87 : vector<16x16xf32>
    %89 = arith.addf %88, %50 : vector<16x16xf32>
    %cst_42 = arith.constant dense<0xFF800000> : vector<16xf32>
    %90 = vector.multi_reduction <maximumf>, %89, %cst_42 [1] : vector<16x16xf32> to vector<16xf32>
    %91 = vector.shape_cast %90 : vector<16xf32> to vector<16x1xf32>
    %92 = vector.broadcast %91 : vector<16x1xf32> to vector<16x16xf32>
    %93 = arith.subf %89, %92 : vector<16x16xf32>
    %94 = math.exp %93 : vector<16x16xf32>
    %cst_43 = arith.constant dense<0.000000e+00> : vector<16xf32>
    %95 = vector.multi_reduction <add>, %94, %cst_43 [1] : vector<16x16xf32> to vector<16xf32>
    %96 = vector.shape_cast %95 : vector<16xf32> to vector<16x1xf32>
    %97 = tpu.reciprocal %96 {approx = true} : vector<16x1xf32> -> vector<16x1xf32>
    %98 = vector.broadcast %97 : vector<16x1xf32> to vector<16x16xf32>
    %99 = arith.mulf %94, %98 : vector<16x16xf32>
    %cst_44 = arith.constant dense<0.000000e+00> : vector<16x8xf32>
    %100 = tpu.matmul %99, %85, %cst_44 {dimension_numbers = #tpu.dot_dimension_numbers<[1], [0], [0], [1], [0, 0, 1, 1], [], []>} : vector<16x16xf32>, vector<16x8xf32>, vector<16x8xf32> -> vector<16x8xf32>
    %101 = vector.extract_strided_slice %62 {offsets = [8, 0], sizes = [8, 32], strides = [1, 1]} : vector<32x32xf32> to vector<8x32xf32>
    %cst_45 = arith.constant dense<0.000000e+00> : vector<16x32xf32>
    %102 = tpu.matmul %100, %101, %cst_45 {dimension_numbers = #tpu.dot_dimension_numbers<[1], [0], [0], [1], [0, 0, 1, 1], [], []>} : vector<16x8xf32>, vector<8x32xf32>, vector<16x32xf32> -> vector<16x32xf32>
    %103 = arith.addf %82, %102 : vector<16x32xf32>
    %104 = vector.extract_strided_slice %58 {offsets = [0, 16], sizes = [16, 8], strides = [1, 1]} : vector<16x32xf32> to vector<16x8xf32>
    %105 = vector.extract_strided_slice %59 {offsets = [0, 16], sizes = [16, 8], strides = [1, 1]} : vector<16x32xf32> to vector<16x8xf32>
    %106 = vector.extract_strided_slice %60 {offsets = [0, 16], sizes = [16, 8], strides = [1, 1]} : vector<16x32xf32> to vector<16x8xf32>
    %cst_46 = arith.constant dense<0.000000e+00> : vector<16x16xf32>
    %107 = tpu.matmul %104, %105, %cst_46 {dimension_numbers = #tpu.dot_dimension_numbers<[1], [1], [0], [0], [0, 0, 1, 0], [], []>} : vector<16x8xf32>, vector<16x8xf32>, vector<16x16xf32> -> vector<16x16xf32>
    %cst_47 = arith.constant 0.353553385 : f32
    %108 = vector.broadcast %cst_47 : f32 to vector<16x16xf32>
    %109 = arith.mulf %107, %108 : vector<16x16xf32>
    %110 = arith.addf %109, %50 : vector<16x16xf32>
    %cst_48 = arith.constant dense<0xFF800000> : vector<16xf32>
    %111 = vector.multi_reduction <maximumf>, %110, %cst_48 [1] : vector<16x16xf32> to vector<16xf32>
    %112 = vector.shape_cast %111 : vector<16xf32> to vector<16x1xf32>
    %113 = vector.broadcast %112 : vector<16x1xf32> to vector<16x16xf32>
    %114 = arith.subf %110, %113 : vector<16x16xf32>
    %115 = math.exp %114 : vector<16x16xf32>
    %cst_49 = arith.constant dense<0.000000e+00> : vector<16xf32>
    %116 = vector.multi_reduction <add>, %115, %cst_49 [1] : vector<16x16xf32> to vector<16xf32>
    %117 = vector.shape_cast %116 : vector<16xf32> to vector<16x1xf32>
    %118 = tpu.reciprocal %117 {approx = true} : vector<16x1xf32> -> vector<16x1xf32>
    %119 = vector.broadcast %118 : vector<16x1xf32> to vector<16x16xf32>
    %120 = arith.mulf %115, %119 : vector<16x16xf32>
    %cst_50 = arith.constant dense<0.000000e+00> : vector<16x8xf32>
    %121 = tpu.matmul %120, %106, %cst_50 {dimension_numbers = #tpu.dot_dimension_numbers<[1], [0], [0], [1], [0, 0, 1, 1], [], []>} : vector<16x16xf32>, vector<16x8xf32>, vector<16x8xf32> -> vector<16x8xf32>
    %122 = vector.extract_strided_slice %62 {offsets = [16, 0], sizes = [8, 32], strides = [1, 1]} : vector<32x32xf32> to vector<8x32xf32>
    %cst_51 = arith.constant dense<0.000000e+00> : vector<16x32xf32>
    %123 = tpu.matmul %121, %122, %cst_51 {dimension_numbers = #tpu.dot_dimension_numbers<[1], [0], [0], [1], [0, 0, 1, 1], [], []>} : vector<16x8xf32>, vector<8x32xf32>, vector<16x32xf32> -> vector<16x32xf32>
    %124 = arith.addf %103, %123 : vector<16x32xf32>
    %125 = vector.extract_strided_slice %58 {offsets = [0, 24], sizes = [16, 8], strides = [1, 1]} : vector<16x32xf32> to vector<16x8xf32>
    %126 = vector.extract_strided_slice %59 {offsets = [0, 24], sizes = [16, 8], strides = [1, 1]} : vector<16x32xf32> to vector<16x8xf32>
    %127 = vector.extract_strided_slice %60 {offsets = [0, 24], sizes = [16, 8], strides = [1, 1]} : vector<16x32xf32> to vector<16x8xf32>
    %cst_52 = arith.constant dense<0.000000e+00> : vector<16x16xf32>
    %128 = tpu.matmul %125, %126, %cst_52 {dimension_numbers = #tpu.dot_dimension_numbers<[1], [1], [0], [0], [0, 0, 1, 0], [], []>} : vector<16x8xf32>, vector<16x8xf32>, vector<16x16xf32> -> vector<16x16xf32>
    %cst_53 = arith.constant 0.353553385 : f32
    %129 = vector.broadcast %cst_53 : f32 to vector<16x16xf32>
    %130 = arith.mulf %128, %129 : vector<16x16xf32>
    %131 = arith.addf %130, %50 : vector<16x16xf32>
    %cst_54 = arith.constant dense<0xFF800000> : vector<16xf32>
    %132 = vector.multi_reduction <maximumf>, %131, %cst_54 [1] : vector<16x16xf32> to vector<16xf32>
    %133 = vector.shape_cast %132 : vector<16xf32> to vector<16x1xf32>
    %134 = vector.broadcast %133 : vector<16x1xf32> to vector<16x16xf32>
    %135 = arith.subf %131, %134 : vector<16x16xf32>
    %136 = math.exp %135 : vector<16x16xf32>
    %cst_55 = arith.constant dense<0.000000e+00> : vector<16xf32>
    %137 = vector.multi_reduction <add>, %136, %cst_55 [1] : vector<16x16xf32> to vector<16xf32>
    %138 = vector.shape_cast %137 : vector<16xf32> to vector<16x1xf32>
    %139 = tpu.reciprocal %138 {approx = true} : vector<16x1xf32> -> vector<16x1xf32>
    %140 = vector.broadcast %139 : vector<16x1xf32> to vector<16x16xf32>
    %141 = arith.mulf %136, %140 : vector<16x16xf32>
    %cst_56 = arith.constant dense<0.000000e+00> : vector<16x8xf32>
    %142 = tpu.matmul %141, %127, %cst_56 {dimension_numbers = #tpu.dot_dimension_numbers<[1], [0], [0], [1], [0, 0, 1, 1], [], []>} : vector<16x16xf32>, vector<16x8xf32>, vector<16x8xf32> -> vector<16x8xf32>
    %143 = vector.extract_strided_slice %62 {offsets = [24, 0], sizes = [8, 32], strides = [1, 1]} : vector<32x32xf32> to vector<8x32xf32>
    %cst_57 = arith.constant dense<0.000000e+00> : vector<16x32xf32>
    %144 = tpu.matmul %142, %143, %cst_57 {dimension_numbers = #tpu.dot_dimension_numbers<[1], [0], [0], [1], [0, 0, 1, 1], [], []>} : vector<16x8xf32>, vector<8x32xf32>, vector<16x32xf32> -> vector<16x32xf32>
    %145 = arith.addf %124, %144 : vector<16x32xf32>
    %c0_58 = arith.constant 0 : index
    %c0_59 = arith.constant 0 : index
    %c0_60 = arith.constant 0 : index
    %146 = vector.load %arg12[%c0_58, %c0_59, %c0_60] : memref<2x1x32xf32, #tpu.memory_space<vmem>>, vector<1x1x32xf32>
    %147 = vector.shape_cast %146 : vector<1x1x32xf32> to vector<1x32xf32>
    %148 = vector.broadcast %147 : vector<1x32xf32> to vector<16x32xf32>
    %149 = arith.addf %145, %148 : vector<16x32xf32>
    %150 = arith.addf %49, %149 : vector<16x32xf32>
    %c0_61 = arith.constant 0 : index
    %c0_62 = arith.constant 0 : index
    %c0_63 = arith.constant 0 : index
    %151 = vector.load %arg13[%c0_61, %c0_62, %c0_63] : memref<2x1x32xf32, #tpu.memory_space<vmem>>, vector<1x1x32xf32>
    %152 = vector.shape_cast %151 : vector<1x1x32xf32> to vector<1x32xf32>
    %c0_64 = arith.constant 0 : index
    %c0_65 = arith.constant 0 : index
    %c0_66 = arith.constant 0 : index
    %153 = vector.load %arg14[%c0_64, %c0_65, %c0_66] : memref<2x1x32xf32, #tpu.memory_space<vmem>>, vector<1x1x32xf32>
    %154 = vector.shape_cast %153 : vector<1x1x32xf32> to vector<1x32xf32>
    %cst_67 = arith.constant dense<0.000000e+00> : vector<16xf32>
    %155 = vector.multi_reduction <add>, %150, %cst_67 [1] : vector<16x32xf32> to vector<16xf32>
    %156 = vector.shape_cast %155 : vector<16xf32> to vector<16x1xf32>
    %cst_68 = arith.constant 3.200000e+01 : f32
    %157 = vector.broadcast %cst_68 : f32 to vector<16x1xf32>
    %158 = arith.divf %156, %157 : vector<16x1xf32>
    %159 = vector.broadcast %158 : vector<16x1xf32> to vector<16x32xf32>
    %160 = arith.subf %150, %159 : vector<16x32xf32>
    %161 = arith.mulf %160, %160 : vector<16x32xf32>
    %cst_69 = arith.constant dense<0.000000e+00> : vector<16xf32>
    %162 = vector.multi_reduction <add>, %161, %cst_69 [1] : vector<16x32xf32> to vector<16xf32>
    %163 = vector.shape_cast %162 : vector<16xf32> to vector<16x1xf32>
    %cst_70 = arith.constant 3.200000e+01 : f32
    %164 = vector.broadcast %cst_70 : f32 to vector<16x1xf32>
    %165 = arith.divf %163, %164 : vector<16x1xf32>
    %166 = vector.broadcast %158 : vector<16x1xf32> to vector<16x32xf32>
    %167 = arith.subf %150, %166 : vector<16x32xf32>
    %cst_71 = arith.constant 9.99999996E-13 : f32
    %168 = vector.broadcast %cst_71 : f32 to vector<16x1xf32>
    %169 = arith.addf %165, %168 : vector<16x1xf32>
    %170 = math.rsqrt %169 : vector<16x1xf32>
    %171 = vector.broadcast %170 : vector<16x1xf32> to vector<16x32xf32>
    %172 = arith.mulf %167, %171 : vector<16x32xf32>
    %173 = vector.broadcast %152 : vector<1x32xf32> to vector<16x32xf32>
    %174 = arith.mulf %172, %173 : vector<16x32xf32>
    %175 = vector.broadcast %154 : vector<1x32xf32> to vector<16x32xf32>
    %176 = arith.addf %174, %175 : vector<16x32xf32>
    %c0_72 = arith.constant 0 : index
    %c0_73 = arith.constant 0 : index
    %c0_74 = arith.constant 0 : index
    %177 = vector.load %arg15[%c0_72, %c0_73, %c0_74] : memref<2x32x64xf32, #tpu.memory_space<vmem>>, vector<1x32x64xf32>
    %178 = vector.shape_cast %177 : vector<1x32x64xf32> to vector<32x64xf32>
    %cst_75 = arith.constant dense<0.000000e+00> : vector<16x64xf32>
    %179 = tpu.matmul %176, %178, %cst_75 {dimension_numbers = #tpu.dot_dimension_numbers<[1], [0], [0], [1], [0, 0, 1, 1], [], []>} : vector<16x32xf32>, vector<32x64xf32>, vector<16x64xf32> -> vector<16x64xf32>
    %c0_76 = arith.constant 0 : index
    %c0_77 = arith.constant 0 : index
    %c0_78 = arith.constant 0 : index
    %180 = vector.load %arg16[%c0_76, %c0_77, %c0_78] : memref<2x1x64xf32, #tpu.memory_space<vmem>>, vector<1x1x64xf32>
    %181 = vector.shape_cast %180 : vector<1x1x64xf32> to vector<1x64xf32>
    %182 = vector.broadcast %181 : vector<1x64xf32> to vector<16x64xf32>
    %183 = arith.addf %179, %182 : vector<16x64xf32>
    %184 = arith.mulf %183, %183 : vector<16x64xf32>
    %185 = arith.mulf %183, %184 : vector<16x64xf32>
    %cst_79 = arith.constant 4.471500e-02 : f32
    %186 = vector.broadcast %cst_79 : f32 to vector<16x64xf32>
    %187 = arith.mulf %186, %185 : vector<16x64xf32>
    %188 = arith.addf %183, %187 : vector<16x64xf32>
    %cst_80 = arith.constant 0.797884583 : f32
    %189 = vector.broadcast %cst_80 : f32 to vector<16x64xf32>
    %190 = arith.mulf %189, %188 : vector<16x64xf32>
    %191 = math.tanh %190 : vector<16x64xf32>
    %cst_81 = arith.constant 1.000000e+00 : f32
    %192 = vector.broadcast %cst_81 : f32 to vector<16x64xf32>
    %193 = arith.addf %192, %191 : vector<16x64xf32>
    %cst_82 = arith.constant 5.000000e-01 : f32
    %194 = vector.broadcast %cst_82 : f32 to vector<16x64xf32>
    %195 = arith.mulf %194, %193 : vector<16x64xf32>
    %196 = arith.mulf %183, %195 : vector<16x64xf32>
    %c0_83 = arith.constant 0 : index
    %c0_84 = arith.constant 0 : index
    %c0_85 = arith.constant 0 : index
    %197 = vector.load %arg17[%c0_83, %c0_84, %c0_85] : memref<2x64x32xf32, #tpu.memory_space<vmem>>, vector<1x64x32xf32>
    %198 = vector.shape_cast %197 : vector<1x64x32xf32> to vector<64x32xf32>
    %cst_86 = arith.constant dense<0.000000e+00> : vector<16x32xf32>
    %199 = tpu.matmul %196, %198, %cst_86 {dimension_numbers = #tpu.dot_dimension_numbers<[1], [0], [0], [1], [0, 0, 1, 1], [], []>} : vector<16x64xf32>, vector<64x32xf32>, vector<16x32xf32> -> vector<16x32xf32>
    %c0_87 = arith.constant 0 : index
    %c0_88 = arith.constant 0 : index
    %c0_89 = arith.constant 0 : index
    %200 = vector.load %arg18[%c0_87, %c0_88, %c0_89] : memref<2x1x32xf32, #tpu.memory_space<vmem>>, vector<1x1x32xf32>
    %201 = vector.shape_cast %200 : vector<1x1x32xf32> to vector<1x32xf32>
    %202 = vector.broadcast %201 : vector<1x32xf32> to vector<16x32xf32>
    %203 = arith.addf %199, %202 : vector<16x32xf32>
    %204 = arith.addf %176, %203 : vector<16x32xf32>
    %c0_90 = arith.constant 0 : index
    %c0_91 = arith.constant 0 : index
    %c0_92 = arith.constant 0 : index
    %205 = vector.load %arg19[%c0_90, %c0_91, %c0_92] : memref<2x1x32xf32, #tpu.memory_space<vmem>>, vector<1x1x32xf32>
    %206 = vector.shape_cast %205 : vector<1x1x32xf32> to vector<1x32xf32>
    %c0_93 = arith.constant 0 : index
    %c0_94 = arith.constant 0 : index
    %c0_95 = arith.constant 0 : index
    %207 = vector.load %arg20[%c0_93, %c0_94, %c0_95] : memref<2x1x32xf32, #tpu.memory_space<vmem>>, vector<1x1x32xf32>
    %208 = vector.shape_cast %207 : vector<1x1x32xf32> to vector<1x32xf32>
    %cst_96 = arith.constant dense<0.000000e+00> : vector<16xf32>
    %209 = vector.multi_reduction <add>, %204, %cst_96 [1] : vector<16x32xf32> to vector<16xf32>
    %210 = vector.shape_cast %209 : vector<16xf32> to vector<16x1xf32>
    %cst_97 = arith.constant 3.200000e+01 : f32
    %211 = vector.broadcast %cst_97 : f32 to vector<16x1xf32>
    %212 = arith.divf %210, %211 : vector<16x1xf32>
    %213 = vector.broadcast %212 : vector<16x1xf32> to vector<16x32xf32>
    %214 = arith.subf %204, %213 : vector<16x32xf32>
    %215 = arith.mulf %214, %214 : vector<16x32xf32>
    %cst_98 = arith.constant dense<0.000000e+00> : vector<16xf32>
    %216 = vector.multi_reduction <add>, %215, %cst_98 [1] : vector<16x32xf32> to vector<16xf32>
    %217 = vector.shape_cast %216 : vector<16xf32> to vector<16x1xf32>
    %cst_99 = arith.constant 3.200000e+01 : f32
    %218 = vector.broadcast %cst_99 : f32 to vector<16x1xf32>
    %219 = arith.divf %217, %218 : vector<16x1xf32>
    %220 = vector.broadcast %212 : vector<16x1xf32> to vector<16x32xf32>
    %221 = arith.subf %204, %220 : vector<16x32xf32>
    %cst_100 = arith.constant 9.99999996E-13 : f32
    %222 = vector.broadcast %cst_100 : f32 to vector<16x1xf32>
    %223 = arith.addf %219, %222 : vector<16x1xf32>
    %224 = math.rsqrt %223 : vector<16x1xf32>
    %225 = vector.broadcast %224 : vector<16x1xf32> to vector<16x32xf32>
    %226 = arith.mulf %221, %225 : vector<16x32xf32>
    %227 = vector.broadcast %206 : vector<1x32xf32> to vector<16x32xf32>
    %228 = arith.mulf %226, %227 : vector<16x32xf32>
    %229 = vector.broadcast %208 : vector<1x32xf32> to vector<16x32xf32>
    %230 = arith.addf %228, %229 : vector<16x32xf32>
    %c1 = arith.constant 1 : index
    %c0_101 = arith.constant 0 : index
    %c0_102 = arith.constant 0 : index
    %231 = vector.load %arg9[%c1, %c0_101, %c0_102] : memref<2x32x96xf32, #tpu.memory_space<vmem>>, vector<1x32x96xf32>
    %232 = vector.shape_cast %231 : vector<1x32x96xf32> to vector<32x96xf32>
    %cst_103 = arith.constant dense<0.000000e+00> : vector<16x96xf32>
    %233 = tpu.matmul %230, %232, %cst_103 {dimension_numbers = #tpu.dot_dimension_numbers<[1], [0], [0], [1], [0, 0, 1, 1], [], []>} : vector<16x32xf32>, vector<32x96xf32>, vector<16x96xf32> -> vector<16x96xf32>
    %c1_104 = arith.constant 1 : index
    %c0_105 = arith.constant 0 : index
    %c0_106 = arith.constant 0 : index
    %234 = vector.load %arg10[%c1_104, %c0_105, %c0_106] : memref<2x1x96xf32, #tpu.memory_space<vmem>>, vector<1x1x96xf32>
    %235 = vector.shape_cast %234 : vector<1x1x96xf32> to vector<1x96xf32>
    %236 = vector.broadcast %235 : vector<1x96xf32> to vector<16x96xf32>
    %237 = arith.addf %233, %236 : vector<16x96xf32>
    %238 = vector.extract_strided_slice %237 {offsets = [0, 0], sizes = [16, 32], strides = [1, 1]} : vector<16x96xf32> to vector<16x32xf32>
    %239 = vector.extract_strided_slice %237 {offsets = [0, 32], sizes = [16, 32], strides = [1, 1]} : vector<16x96xf32> to vector<16x32xf32>
    %240 = vector.extract_strided_slice %237 {offsets = [0, 64], sizes = [16, 32], strides = [1, 1]} : vector<16x96xf32> to vector<16x32xf32>
    %c1_107 = arith.constant 1 : index
    %c0_108 = arith.constant 0 : index
    %c0_109 = arith.constant 0 : index
    %241 = vector.load %arg11[%c1_107, %c0_108, %c0_109] : memref<2x32x32xf32, #tpu.memory_space<vmem>>, vector<1x32x32xf32>
    %242 = vector.shape_cast %241 : vector<1x32x32xf32> to vector<32x32xf32>
    %243 = vector.extract_strided_slice %238 {offsets = [0, 0], sizes = [16, 8], strides = [1, 1]} : vector<16x32xf32> to vector<16x8xf32>
    %244 = vector.extract_strided_slice %239 {offsets = [0, 0], sizes = [16, 8], strides = [1, 1]} : vector<16x32xf32> to vector<16x8xf32>
    %245 = vector.extract_strided_slice %240 {offsets = [0, 0], sizes = [16, 8], strides = [1, 1]} : vector<16x32xf32> to vector<16x8xf32>
    %cst_110 = arith.constant dense<0.000000e+00> : vector<16x16xf32>
    %246 = tpu.matmul %243, %244, %cst_110 {dimension_numbers = #tpu.dot_dimension_numbers<[1], [1], [0], [0], [0, 0, 1, 0], [], []>} : vector<16x8xf32>, vector<16x8xf32>, vector<16x16xf32> -> vector<16x16xf32>
    %cst_111 = arith.constant 0.353553385 : f32
    %247 = vector.broadcast %cst_111 : f32 to vector<16x16xf32>
    %248 = arith.mulf %246, %247 : vector<16x16xf32>
    %249 = arith.addf %248, %50 : vector<16x16xf32>
    %cst_112 = arith.constant dense<0xFF800000> : vector<16xf32>
    %250 = vector.multi_reduction <maximumf>, %249, %cst_112 [1] : vector<16x16xf32> to vector<16xf32>
    %251 = vector.shape_cast %250 : vector<16xf32> to vector<16x1xf32>
    %252 = vector.broadcast %251 : vector<16x1xf32> to vector<16x16xf32>
    %253 = arith.subf %249, %252 : vector<16x16xf32>
    %254 = math.exp %253 : vector<16x16xf32>
    %cst_113 = arith.constant dense<0.000000e+00> : vector<16xf32>
    %255 = vector.multi_reduction <add>, %254, %cst_113 [1] : vector<16x16xf32> to vector<16xf32>
    %256 = vector.shape_cast %255 : vector<16xf32> to vector<16x1xf32>
    %257 = tpu.reciprocal %256 {approx = true} : vector<16x1xf32> -> vector<16x1xf32>
    %258 = vector.broadcast %257 : vector<16x1xf32> to vector<16x16xf32>
    %259 = arith.mulf %254, %258 : vector<16x16xf32>
    %cst_114 = arith.constant dense<0.000000e+00> : vector<16x8xf32>
    %260 = tpu.matmul %259, %245, %cst_114 {dimension_numbers = #tpu.dot_dimension_numbers<[1], [0], [0], [1], [0, 0, 1, 1], [], []>} : vector<16x16xf32>, vector<16x8xf32>, vector<16x8xf32> -> vector<16x8xf32>
    %261 = vector.extract_strided_slice %242 {offsets = [0, 0], sizes = [8, 32], strides = [1, 1]} : vector<32x32xf32> to vector<8x32xf32>
    %cst_115 = arith.constant dense<0.000000e+00> : vector<16x32xf32>
    %262 = tpu.matmul %260, %261, %cst_115 {dimension_numbers = #tpu.dot_dimension_numbers<[1], [0], [0], [1], [0, 0, 1, 1], [], []>} : vector<16x8xf32>, vector<8x32xf32>, vector<16x32xf32> -> vector<16x32xf32>
    %263 = vector.extract_strided_slice %238 {offsets = [0, 8], sizes = [16, 8], strides = [1, 1]} : vector<16x32xf32> to vector<16x8xf32>
    %264 = vector.extract_strided_slice %239 {offsets = [0, 8], sizes = [16, 8], strides = [1, 1]} : vector<16x32xf32> to vector<16x8xf32>
    %265 = vector.extract_strided_slice %240 {offsets = [0, 8], sizes = [16, 8], strides = [1, 1]} : vector<16x32xf32> to vector<16x8xf32>
    %cst_116 = arith.constant dense<0.000000e+00> : vector<16x16xf32>
    %266 = tpu.matmul %263, %264, %cst_116 {dimension_numbers = #tpu.dot_dimension_numbers<[1], [1], [0], [0], [0, 0, 1, 0], [], []>} : vector<16x8xf32>, vector<16x8xf32>, vector<16x16xf32> -> vector<16x16xf32>
    %cst_117 = arith.constant 0.353553385 : f32
    %267 = vector.broadcast %cst_117 : f32 to vector<16x16xf32>
    %268 = arith.mulf %266, %267 : vector<16x16xf32>
    %269 = arith.addf %268, %50 : vector<16x16xf32>
    %cst_118 = arith.constant dense<0xFF800000> : vector<16xf32>
    %270 = vector.multi_reduction <maximumf>, %269, %cst_118 [1] : vector<16x16xf32> to vector<16xf32>
    %271 = vector.shape_cast %270 : vector<16xf32> to vector<16x1xf32>
    %272 = vector.broadcast %271 : vector<16x1xf32> to vector<16x16xf32>
    %273 = arith.subf %269, %272 : vector<16x16xf32>
    %274 = math.exp %273 : vector<16x16xf32>
    %cst_119 = arith.constant dense<0.000000e+00> : vector<16xf32>
    %275 = vector.multi_reduction <add>, %274, %cst_119 [1] : vector<16x16xf32> to vector<16xf32>
    %276 = vector.shape_cast %275 : vector<16xf32> to vector<16x1xf32>
    %277 = tpu.reciprocal %276 {approx = true} : vector<16x1xf32> -> vector<16x1xf32>
    %278 = vector.broadcast %277 : vector<16x1xf32> to vector<16x16xf32>
    %279 = arith.mulf %274, %278 : vector<16x16xf32>
    %cst_120 = arith.constant dense<0.000000e+00> : vector<16x8xf32>
    %280 = tpu.matmul %279, %265, %cst_120 {dimension_numbers = #tpu.dot_dimension_numbers<[1], [0], [0], [1], [0, 0, 1, 1], [], []>} : vector<16x16xf32>, vector<16x8xf32>, vector<16x8xf32> -> vector<16x8xf32>
    %281 = vector.extract_strided_slice %242 {offsets = [8, 0], sizes = [8, 32], strides = [1, 1]} : vector<32x32xf32> to vector<8x32xf32>
    %cst_121 = arith.constant dense<0.000000e+00> : vector<16x32xf32>
    %282 = tpu.matmul %280, %281, %cst_121 {dimension_numbers = #tpu.dot_dimension_numbers<[1], [0], [0], [1], [0, 0, 1, 1], [], []>} : vector<16x8xf32>, vector<8x32xf32>, vector<16x32xf32> -> vector<16x32xf32>
    %283 = arith.addf %262, %282 : vector<16x32xf32>
    %284 = vector.extract_strided_slice %238 {offsets = [0, 16], sizes = [16, 8], strides = [1, 1]} : vector<16x32xf32> to vector<16x8xf32>
    %285 = vector.extract_strided_slice %239 {offsets = [0, 16], sizes = [16, 8], strides = [1, 1]} : vector<16x32xf32> to vector<16x8xf32>
    %286 = vector.extract_strided_slice %240 {offsets = [0, 16], sizes = [16, 8], strides = [1, 1]} : vector<16x32xf32> to vector<16x8xf32>
    %cst_122 = arith.constant dense<0.000000e+00> : vector<16x16xf32>
    %287 = tpu.matmul %284, %285, %cst_122 {dimension_numbers = #tpu.dot_dimension_numbers<[1], [1], [0], [0], [0, 0, 1, 0], [], []>} : vector<16x8xf32>, vector<16x8xf32>, vector<16x16xf32> -> vector<16x16xf32>
    %cst_123 = arith.constant 0.353553385 : f32
    %288 = vector.broadcast %cst_123 : f32 to vector<16x16xf32>
    %289 = arith.mulf %287, %288 : vector<16x16xf32>
    %290 = arith.addf %289, %50 : vector<16x16xf32>
    %cst_124 = arith.constant dense<0xFF800000> : vector<16xf32>
    %291 = vector.multi_reduction <maximumf>, %290, %cst_124 [1] : vector<16x16xf32> to vector<16xf32>
    %292 = vector.shape_cast %291 : vector<16xf32> to vector<16x1xf32>
    %293 = vector.broadcast %292 : vector<16x1xf32> to vector<16x16xf32>
    %294 = arith.subf %290, %293 : vector<16x16xf32>
    %295 = math.exp %294 : vector<16x16xf32>
    %cst_125 = arith.constant dense<0.000000e+00> : vector<16xf32>
    %296 = vector.multi_reduction <add>, %295, %cst_125 [1] : vector<16x16xf32> to vector<16xf32>
    %297 = vector.shape_cast %296 : vector<16xf32> to vector<16x1xf32>
    %298 = tpu.reciprocal %297 {approx = true} : vector<16x1xf32> -> vector<16x1xf32>
    %299 = vector.broadcast %298 : vector<16x1xf32> to vector<16x16xf32>
    %300 = arith.mulf %295, %299 : vector<16x16xf32>
    %cst_126 = arith.constant dense<0.000000e+00> : vector<16x8xf32>
    %301 = tpu.matmul %300, %286, %cst_126 {dimension_numbers = #tpu.dot_dimension_numbers<[1], [0], [0], [1], [0, 0, 1, 1], [], []>} : vector<16x16xf32>, vector<16x8xf32>, vector<16x8xf32> -> vector<16x8xf32>
    %302 = vector.extract_strided_slice %242 {offsets = [16, 0], sizes = [8, 32], strides = [1, 1]} : vector<32x32xf32> to vector<8x32xf32>
    %cst_127 = arith.constant dense<0.000000e+00> : vector<16x32xf32>
    %303 = tpu.matmul %301, %302, %cst_127 {dimension_numbers = #tpu.dot_dimension_numbers<[1], [0], [0], [1], [0, 0, 1, 1], [], []>} : vector<16x8xf32>, vector<8x32xf32>, vector<16x32xf32> -> vector<16x32xf32>
    %304 = arith.addf %283, %303 : vector<16x32xf32>
    %305 = vector.extract_strided_slice %238 {offsets = [0, 24], sizes = [16, 8], strides = [1, 1]} : vector<16x32xf32> to vector<16x8xf32>
    %306 = vector.extract_strided_slice %239 {offsets = [0, 24], sizes = [16, 8], strides = [1, 1]} : vector<16x32xf32> to vector<16x8xf32>
    %307 = vector.extract_strided_slice %240 {offsets = [0, 24], sizes = [16, 8], strides = [1, 1]} : vector<16x32xf32> to vector<16x8xf32>
    %cst_128 = arith.constant dense<0.000000e+00> : vector<16x16xf32>
    %308 = tpu.matmul %305, %306, %cst_128 {dimension_numbers = #tpu.dot_dimension_numbers<[1], [1], [0], [0], [0, 0, 1, 0], [], []>} : vector<16x8xf32>, vector<16x8xf32>, vector<16x16xf32> -> vector<16x16xf32>
    %cst_129 = arith.constant 0.353553385 : f32
    %309 = vector.broadcast %cst_129 : f32 to vector<16x16xf32>
    %310 = arith.mulf %308, %309 : vector<16x16xf32>
    %311 = arith.addf %310, %50 : vector<16x16xf32>
    %cst_130 = arith.constant dense<0xFF800000> : vector<16xf32>
    %312 = vector.multi_reduction <maximumf>, %311, %cst_130 [1] : vector<16x16xf32> to vector<16xf32>
    %313 = vector.shape_cast %312 : vector<16xf32> to vector<16x1xf32>
    %314 = vector.broadcast %313 : vector<16x1xf32> to vector<16x16xf32>
    %315 = arith.subf %311, %314 : vector<16x16xf32>
    %316 = math.exp %315 : vector<16x16xf32>
    %cst_131 = arith.constant dense<0.000000e+00> : vector<16xf32>
    %317 = vector.multi_reduction <add>, %316, %cst_131 [1] : vector<16x16xf32> to vector<16xf32>
    %318 = vector.shape_cast %317 : vector<16xf32> to vector<16x1xf32>
    %319 = tpu.reciprocal %318 {approx = true} : vector<16x1xf32> -> vector<16x1xf32>
    %320 = vector.broadcast %319 : vector<16x1xf32> to vector<16x16xf32>
    %321 = arith.mulf %316, %320 : vector<16x16xf32>
    %cst_132 = arith.constant dense<0.000000e+00> : vector<16x8xf32>
    %322 = tpu.matmul %321, %307, %cst_132 {dimension_numbers = #tpu.dot_dimension_numbers<[1], [0], [0], [1], [0, 0, 1, 1], [], []>} : vector<16x16xf32>, vector<16x8xf32>, vector<16x8xf32> -> vector<16x8xf32>
    %323 = vector.extract_strided_slice %242 {offsets = [24, 0], sizes = [8, 32], strides = [1, 1]} : vector<32x32xf32> to vector<8x32xf32>
    %cst_133 = arith.constant dense<0.000000e+00> : vector<16x32xf32>
    %324 = tpu.matmul %322, %323, %cst_133 {dimension_numbers = #tpu.dot_dimension_numbers<[1], [0], [0], [1], [0, 0, 1, 1], [], []>} : vector<16x8xf32>, vector<8x32xf32>, vector<16x32xf32> -> vector<16x32xf32>
    %325 = arith.addf %304, %324 : vector<16x32xf32>
    %c1_134 = arith.constant 1 : index
    %c0_135 = arith.constant 0 : index
    %c0_136 = arith.constant 0 : index
    %326 = vector.load %arg12[%c1_134, %c0_135, %c0_136] : memref<2x1x32xf32, #tpu.memory_space<vmem>>, vector<1x1x32xf32>
    %327 = vector.shape_cast %326 : vector<1x1x32xf32> to vector<1x32xf32>
    %328 = vector.broadcast %327 : vector<1x32xf32> to vector<16x32xf32>
    %329 = arith.addf %325, %328 : vector<16x32xf32>
    %330 = arith.addf %230, %329 : vector<16x32xf32>
    %c1_137 = arith.constant 1 : index
    %c0_138 = arith.constant 0 : index
    %c0_139 = arith.constant 0 : index
    %331 = vector.load %arg13[%c1_137, %c0_138, %c0_139] : memref<2x1x32xf32, #tpu.memory_space<vmem>>, vector<1x1x32xf32>
    %332 = vector.shape_cast %331 : vector<1x1x32xf32> to vector<1x32xf32>
    %c1_140 = arith.constant 1 : index
    %c0_141 = arith.constant 0 : index
    %c0_142 = arith.constant 0 : index
    %333 = vector.load %arg14[%c1_140, %c0_141, %c0_142] : memref<2x1x32xf32, #tpu.memory_space<vmem>>, vector<1x1x32xf32>
    %334 = vector.shape_cast %333 : vector<1x1x32xf32> to vector<1x32xf32>
    %cst_143 = arith.constant dense<0.000000e+00> : vector<16xf32>
    %335 = vector.multi_reduction <add>, %330, %cst_143 [1] : vector<16x32xf32> to vector<16xf32>
    %336 = vector.shape_cast %335 : vector<16xf32> to vector<16x1xf32>
    %cst_144 = arith.constant 3.200000e+01 : f32
    %337 = vector.broadcast %cst_144 : f32 to vector<16x1xf32>
    %338 = arith.divf %336, %337 : vector<16x1xf32>
    %339 = vector.broadcast %338 : vector<16x1xf32> to vector<16x32xf32>
    %340 = arith.subf %330, %339 : vector<16x32xf32>
    %341 = arith.mulf %340, %340 : vector<16x32xf32>
    %cst_145 = arith.constant dense<0.000000e+00> : vector<16xf32>
    %342 = vector.multi_reduction <add>, %341, %cst_145 [1] : vector<16x32xf32> to vector<16xf32>
    %343 = vector.shape_cast %342 : vector<16xf32> to vector<16x1xf32>
    %cst_146 = arith.constant 3.200000e+01 : f32
    %344 = vector.broadcast %cst_146 : f32 to vector<16x1xf32>
    %345 = arith.divf %343, %344 : vector<16x1xf32>
    %346 = vector.broadcast %338 : vector<16x1xf32> to vector<16x32xf32>
    %347 = arith.subf %330, %346 : vector<16x32xf32>
    %cst_147 = arith.constant 9.99999996E-13 : f32
    %348 = vector.broadcast %cst_147 : f32 to vector<16x1xf32>
    %349 = arith.addf %345, %348 : vector<16x1xf32>
    %350 = math.rsqrt %349 : vector<16x1xf32>
    %351 = vector.broadcast %350 : vector<16x1xf32> to vector<16x32xf32>
    %352 = arith.mulf %347, %351 : vector<16x32xf32>
    %353 = vector.broadcast %332 : vector<1x32xf32> to vector<16x32xf32>
    %354 = arith.mulf %352, %353 : vector<16x32xf32>
    %355 = vector.broadcast %334 : vector<1x32xf32> to vector<16x32xf32>
    %356 = arith.addf %354, %355 : vector<16x32xf32>
    %c1_148 = arith.constant 1 : index
    %c0_149 = arith.constant 0 : index
    %c0_150 = arith.constant 0 : index
    %357 = vector.load %arg15[%c1_148, %c0_149, %c0_150] : memref<2x32x64xf32, #tpu.memory_space<vmem>>, vector<1x32x64xf32>
    %358 = vector.shape_cast %357 : vector<1x32x64xf32> to vector<32x64xf32>
    %cst_151 = arith.constant dense<0.000000e+00> : vector<16x64xf32>
    %359 = tpu.matmul %356, %358, %cst_151 {dimension_numbers = #tpu.dot_dimension_numbers<[1], [0], [0], [1], [0, 0, 1, 1], [], []>} : vector<16x32xf32>, vector<32x64xf32>, vector<16x64xf32> -> vector<16x64xf32>
    %c1_152 = arith.constant 1 : index
    %c0_153 = arith.constant 0 : index
    %c0_154 = arith.constant 0 : index
    %360 = vector.load %arg16[%c1_152, %c0_153, %c0_154] : memref<2x1x64xf32, #tpu.memory_space<vmem>>, vector<1x1x64xf32>
    %361 = vector.shape_cast %360 : vector<1x1x64xf32> to vector<1x64xf32>
    %362 = vector.broadcast %361 : vector<1x64xf32> to vector<16x64xf32>
    %363 = arith.addf %359, %362 : vector<16x64xf32>
    %364 = arith.mulf %363, %363 : vector<16x64xf32>
    %365 = arith.mulf %363, %364 : vector<16x64xf32>
    %cst_155 = arith.constant 4.471500e-02 : f32
    %366 = vector.broadcast %cst_155 : f32 to vector<16x64xf32>
    %367 = arith.mulf %366, %365 : vector<16x64xf32>
    %368 = arith.addf %363, %367 : vector<16x64xf32>
    %cst_156 = arith.constant 0.797884583 : f32
    %369 = vector.broadcast %cst_156 : f32 to vector<16x64xf32>
    %370 = arith.mulf %369, %368 : vector<16x64xf32>
    %371 = math.tanh %370 : vector<16x64xf32>
    %cst_157 = arith.constant 1.000000e+00 : f32
    %372 = vector.broadcast %cst_157 : f32 to vector<16x64xf32>
    %373 = arith.addf %372, %371 : vector<16x64xf32>
    %cst_158 = arith.constant 5.000000e-01 : f32
    %374 = vector.broadcast %cst_158 : f32 to vector<16x64xf32>
    %375 = arith.mulf %374, %373 : vector<16x64xf32>
    %376 = arith.mulf %363, %375 : vector<16x64xf32>
    %c1_159 = arith.constant 1 : index
    %c0_160 = arith.constant 0 : index
    %c0_161 = arith.constant 0 : index
    %377 = vector.load %arg17[%c1_159, %c0_160, %c0_161] : memref<2x64x32xf32, #tpu.memory_space<vmem>>, vector<1x64x32xf32>
    %378 = vector.shape_cast %377 : vector<1x64x32xf32> to vector<64x32xf32>
    %cst_162 = arith.constant dense<0.000000e+00> : vector<16x32xf32>
    %379 = tpu.matmul %376, %378, %cst_162 {dimension_numbers = #tpu.dot_dimension_numbers<[1], [0], [0], [1], [0, 0, 1, 1], [], []>} : vector<16x64xf32>, vector<64x32xf32>, vector<16x32xf32> -> vector<16x32xf32>
    %c1_163 = arith.constant 1 : index
    %c0_164 = arith.constant 0 : index
    %c0_165 = arith.constant 0 : index
    %380 = vector.load %arg18[%c1_163, %c0_164, %c0_165] : memref<2x1x32xf32, #tpu.memory_space<vmem>>, vector<1x1x32xf32>
    %381 = vector.shape_cast %380 : vector<1x1x32xf32> to vector<1x32xf32>
    %382 = vector.broadcast %381 : vector<1x32xf32> to vector<16x32xf32>
    %383 = arith.addf %379, %382 : vector<16x32xf32>
    %384 = arith.addf %356, %383 : vector<16x32xf32>
    %c1_166 = arith.constant 1 : index
    %c0_167 = arith.constant 0 : index
    %c0_168 = arith.constant 0 : index
    %385 = vector.load %arg19[%c1_166, %c0_167, %c0_168] : memref<2x1x32xf32, #tpu.memory_space<vmem>>, vector<1x1x32xf32>
    %386 = vector.shape_cast %385 : vector<1x1x32xf32> to vector<1x32xf32>
    %c1_169 = arith.constant 1 : index
    %c0_170 = arith.constant 0 : index
    %c0_171 = arith.constant 0 : index
    %387 = vector.load %arg20[%c1_169, %c0_170, %c0_171] : memref<2x1x32xf32, #tpu.memory_space<vmem>>, vector<1x1x32xf32>
    %388 = vector.shape_cast %387 : vector<1x1x32xf32> to vector<1x32xf32>
    %cst_172 = arith.constant dense<0.000000e+00> : vector<16xf32>
    %389 = vector.multi_reduction <add>, %384, %cst_172 [1] : vector<16x32xf32> to vector<16xf32>
    %390 = vector.shape_cast %389 : vector<16xf32> to vector<16x1xf32>
    %cst_173 = arith.constant 3.200000e+01 : f32
    %391 = vector.broadcast %cst_173 : f32 to vector<16x1xf32>
    %392 = arith.divf %390, %391 : vector<16x1xf32>
    %393 = vector.broadcast %392 : vector<16x1xf32> to vector<16x32xf32>
    %394 = arith.subf %384, %393 : vector<16x32xf32>
    %395 = arith.mulf %394, %394 : vector<16x32xf32>
    %cst_174 = arith.constant dense<0.000000e+00> : vector<16xf32>
    %396 = vector.multi_reduction <add>, %395, %cst_174 [1] : vector<16x32xf32> to vector<16xf32>
    %397 = vector.shape_cast %396 : vector<16xf32> to vector<16x1xf32>
    %cst_175 = arith.constant 3.200000e+01 : f32
    %398 = vector.broadcast %cst_175 : f32 to vector<16x1xf32>
    %399 = arith.divf %397, %398 : vector<16x1xf32>
    %400 = vector.broadcast %392 : vector<16x1xf32> to vector<16x32xf32>
    %401 = arith.subf %384, %400 : vector<16x32xf32>
    %cst_176 = arith.constant 9.99999996E-13 : f32
    %402 = vector.broadcast %cst_176 : f32 to vector<16x1xf32>
    %403 = arith.addf %399, %402 : vector<16x1xf32>
    %404 = math.rsqrt %403 : vector<16x1xf32>
    %405 = vector.broadcast %404 : vector<16x1xf32> to vector<16x32xf32>
    %406 = arith.mulf %401, %405 : vector<16x32xf32>
    %407 = vector.broadcast %386 : vector<1x32xf32> to vector<16x32xf32>
    %408 = arith.mulf %406, %407 : vector<16x32xf32>
    %409 = vector.broadcast %388 : vector<1x32xf32> to vector<16x32xf32>
    %410 = arith.addf %408, %409 : vector<16x32xf32>
    %c0_177 = arith.constant 0 : index
    %c0_178 = arith.constant 0 : index
    %411 = vector.load %arg21[%c0_177, %c0_178] : memref<32x32xf32, #tpu.memory_space<vmem>>, vector<32x32xf32>
    %cst_179 = arith.constant dense<0.000000e+00> : vector<16x32xf32>
    %412 = tpu.matmul %410, %411, %cst_179 {dimension_numbers = #tpu.dot_dimension_numbers<[1], [0], [0], [1], [0, 0, 1, 1], [], []>} : vector<16x32xf32>, vector<32x32xf32>, vector<16x32xf32> -> vector<16x32xf32>
    %c0_180 = arith.constant 0 : index
    %c0_181 = arith.constant 0 : index
    %413 = vector.load %arg22[%c0_180, %c0_181] : memref<1x32xf32, #tpu.memory_space<vmem>>, vector<1x32xf32>
    %414 = vector.broadcast %413 : vector<1x32xf32> to vector<16x32xf32>
    %415 = arith.addf %412, %414 : vector<16x32xf32>
    %416 = math.tanh %415 : vector<16x32xf32>
    %c0_182 = arith.constant 0 : index
    %c0_183 = arith.constant 0 : index
    %417 = vector.load %arg23[%c0_182, %c0_183] : memref<32x3xf32, #tpu.memory_space<vmem>>, vector<32x3xf32>
    %cst_184 = arith.constant dense<0.000000e+00> : vector<16x3xf32>
    %418 = tpu.matmul %416, %417, %cst_184 {dimension_numbers = #tpu.dot_dimension_numbers<[1], [0], [0], [1], [0, 0, 1, 1], [], []>} : vector<16x32xf32>, vector<32x3xf32>, vector<16x3xf32> -> vector<16x3xf32>
    %c0_185 = arith.constant 0 : index
    %c0_186 = arith.constant 0 : index
    %419 = vector.load %arg24[%c0_185, %c0_186] : memref<1x3xf32, #tpu.memory_space<vmem>>, vector<1x3xf32>
    %420 = vector.broadcast %419 : vector<1x3xf32> to vector<16x3xf32>
    %421 = arith.addf %418, %420 : vector<16x3xf32>
    %422 = vector.extract_strided_slice %421 {offsets = [0, 0], sizes = [1, 3], strides = [1, 1]} : vector<16x3xf32> to vector<1x3xf32>
    %c0_187 = arith.constant 0 : index
    %c0_188 = arith.constant 0 : index
    %423 = vector.load %arg25[%c0_187, %c0_188] : memref<2x3xf32, #tpu.memory_space<vmem>>, vector<1x3xf32>
    tpu.vector_store %arg25[%c0_187, %c0_188], %422 {strides = array<i32>} : memref<2x3xf32, #tpu.memory_space<vmem>>, vector<1x3xf32>,
    %424 = vector.extract_strided_slice %421 {offsets = [8, 0], sizes = [1, 3], strides = [1, 1]} : vector<16x3xf32> to vector<1x3xf32>
    %c1_189 = arith.constant 1 : index
    %c0_190 = arith.constant 0 : index
    %425 = vector.load %arg25[%c1_189, %c0_190] : memref<2x3xf32, #tpu.memory_space<vmem>>, vector<1x3xf32>
    tpu.vector_store %arg25[%c1_189, %c0_190], %424 {strides = array<i32>} : memref<2x3xf32, #tpu.memory_space<vmem>>, vector<1x3xf32>,
    return
  }
}

</mosaic_0001>

<bundles_post_ra>
// kernel: mul.8
= control target key start
LH: loop header
LB: loop body
LE: loop exit
PB: predicated region body
PF: predicated region fallthrough
CT: control target
= control target key end

     0   :  { %vm8_vm0 = vcmask 64512   ;;  %vm14_vm1 = vcmask 130112   ;;  %s42_s0 = inlined_call_operand.vmem [shape: f32[2,8], index: 0, kind: input, shape index: {}]   ;;  %s43_s1 = inlined_call_operand.vmem [shape: f32[16], index: 1, kind: output, shape index: {}]  }
   0x1   :  { %v5_v0 = vld [vmem:[%s42_s0] sm:$0x3]  ;;  %s25_s0 = smov 8  }
   0x2   :  { %6 = vst [vmem:[#allocation1] sm:$0x3] %v5_v0 }
   0x9   :  { %v11_v1 = vld [vmem:[#allocation1 + $0x1] sm:$0x1]   ;;  %v7_v2 = vld [vmem:[#allocation1] sm:$0x1]  }
   0xa   :  { %12 = vrot.lane.b32.xlu0 %v11_v1, %s25_s0  ;;  %9 = vst.msk [vmem:[#allocation0] sm:$0x1] %vm8_vm0, %v7_v2  }
  0x7c   :  { %v13_v3 = vpop.permute.xlu0 %12  }
  0x7d   :  { %15 = vst.msk [vmem:[#allocation0] sm:$0x1] %vm14_vm1, %v13_v3  }
  0x84   :  { %v20_v4 = vld [vmem:[#allocation0] sm:$0x1] }
  0x85   :  { %23 = vst [vmem:[%s43_s1] sm:$0x1] %v20_v4 }

// kernel: bert_linear_sa_forward.1
= control target key start
LH: loop header
LB: loop body
LE: loop exit
PB: predicated region body
PF: predicated region fallthrough
CT: control target
= control target key end

     0   :  { %s5266_s0 = inlined_call_operand.vmem [shape: s32[16,1], index: 0, kind: input, shape index: {}]   ;;  %s5267_s1 = inlined_call_operand.vmem [shape: s32[16,1], index: 1, kind: input, shape index: {}]   ;;  %s5268_s2 = inlined_call_operand.vmem [shape: s32[16,1], index: 2, kind: input, shape index: {}]   ;;  %s5269_s3 = inlined_call_operand.vmem [shape: f32[16,16], index: 3, kind: input, shape index: {}]   ;;  %s5270_s4 = inlined_call_operand.vmem [shape: f32[100,32], index: 4, kind: input, shape index: {}]   ;;  %s5271_s5 = inlined_call_operand.vmem [shape: f32[64,32], index: 5, kind: input, shape index: {}]   ;;  %s5272_s6 = inlined_call_operand.vmem [shape: f32[2,32], index: 6, kind: input, shape index: {}]   ;;  %s5273_s7 = inlined_call_operand.vmem [shape: f32[1,32], index: 7, kind: input, shape index: {}]   ;;  %s5274_s8 = inlined_call_operand.vmem [shape: f32[1,32], index: 8, kind: input, shape index: {}]   ;;  %s5275_s9 = inlined_call_operand.vmem [shape: f32[2,32,96], index: 9, kind: input, shape index: {}]   ;;  %s5276_s10 = inlined_call_operand.vmem [shape: f32[2,1,96], index: 10, kind: input, shape index: {}]   ;;  %s5277_s11 = inlined_call_operand.vmem [shape: f32[2,32,32], index: 11, kind: input, shape index: {}]   ;;  %s5278_s12 = inlined_call_operand.vmem [shape: f32[2,1,32], index: 12, kind: input, shape index: {}]   ;;  %s5279_s13 = inlined_call_operand.vmem [shape: f32[2,1,32], index: 13, kind: input, shape index: {}]   ;;  %s5280_s14 = inlined_call_operand.vmem [shape: f32[2,1,32], index: 14, kind: input, shape index: {}]   ;;  %s5281_s15 = inlined_call_operand.vmem [shape: f32[2,32,64], index: 15, kind: input, shape index: {}]   ;;  %s5282_s16 = inlined_call_operand.vmem [shape: f32[2,1,64], index: 16, kind: input, shape index: {}]   ;;  %s5283_s17 = inlined_call_operand.vmem [shape: f32[2,64,32], index: 17, kind: input, shape index: {}]   ;;  %s5284_s18 = inlined_call_operand.vmem [shape: f32[2,1,32], index: 18, kind: input, shape index: {}]   ;;  %s5285_s19 = inlined_call_operand.vmem [shape: f32[2,1,32], index: 19, kind: input, shape index: {}]   ;;  %s5286_s20 = inlined_call_operand.vmem [shape: f32[2,1,32], index: 20, kind: input, shape index: {}]   ;;  %s5287_s21 = inlined_call_operand.vmem [shape: f32[32,32], index: 21, kind: input, shape index: {}]   ;;  %s5288_s22 = inlined_call_operand.vmem [shape: f32[1,32], index: 22, kind: input, shape index: {}]   ;;  %s5289_s23 = inlined_call_operand.vmem [shape: f32[32,3], index: 23, kind: input, shape index: {}]   ;;  %s5290_s24 = inlined_call_operand.vmem [shape: f32[1,3], index: 24, kind: input, shape index: {}]   ;;  %s5291_s25 = inlined_call_operand.hbm [shape: f32[2,3], index: 25, kind: output, shape index: {}]  }
   0x1   :  { %5310 = sst [smem:[#allocation5_spill]] %s5266_s0 }
   0x2   :  { %5311 = sst [smem:[#allocation6_spill]] %s5267_s1 }
   0x3   :  { %5312 = sst [smem:[#allocation7_spill]] %s5268_s2 }
   0x4   :  { %5313 = sst [smem:[#allocation8_spill]] %s5269_s3 }
   0x5   :  { %5314 = sst [smem:[#allocation9_spill]] %s5270_s4 }
   0x6   :  { %5315 = sst [smem:[#allocation10_spill]] %s5271_s5 }
   0x7   :  { %5316 = sst [smem:[#allocation11_spill]] %s5272_s6 }
   0x8   :  { %5317 = sst [smem:[#allocation12_spill]] %s5273_s7 }
   0x9   :  { %5318 = sst [smem:[#allocation13_spill]] %s5274_s8 }
   0xa   :  { %5319 = sst [smem:[#allocation14_spill]] %s5275_s9 }
   0xb   :  { %5320 = sst [smem:[#allocation15_spill]] %s5286_s20 }
   0xc   :  { %s5321_s6 = sld [smem:[#allocation6_spill]]  ;;  %vm235_vm0 = vcmask 1043456   ;;  %v4517_v2 = vmov 0  }
   0xd   :  { %s5322_s20 = sld [smem:[#allocation5_spill]]  ;;  %4396 = vset.pattern.permute.xlu1 %v4517_v2  ;;  %4395 = vset.pattern.permute.xlu0 %v4517_v2 }
   0xe   :  { %s5323_s1 = sld [smem:[#allocation9_spill]] }
   0xf   :  { %s5324_s2 = sld [smem:[#allocation10_spill]] }
  0x10   :  { %s5325_s4 = sld [smem:[#allocation7_spill]] }
  0x12   :  { %v83_v0 = vld [vmem:[%s5321_s6] sm:$0xff]  ;;  %v84_v5 = vld [vmem:[%s5321_s6 + $0x8] sm:$0xff] }
  0x13   :  { %v81_v1 = vld [vmem:[%s5322_s20] sm:$0xff]  ;;  %102 = vperm.xlu0 %4395, %v83_v0   ;;  %v82_v6 = vld [vmem:[%s5322_s20 + $0x8] sm:$0xff] }
  0x14   :  { %90 = vperm.xlu1 %4396, %v81_v1   ;;  %v137_v3 = vld [vmem:[%s5323_s1 + $0x60] sm:$0xf]  ;;  %v136_v4 = vld [vmem:[%s5323_s1 + $0x58] sm:$0xff]  ;;  %v135_v9 = vld [vmem:[%s5323_s1 + $0x50] sm:$0xff] }
  0x15   :  { %4091 = vmatprep.subr.msk.mxu1 %vm235_vm0, %v137_v3  ;;  %v145_v7 = vld [vmem:[%s5324_s2 + $0x38] sm:$0xff]  ;;  %v144_v8 = vld [vmem:[%s5324_s2 + $0x30] sm:$0xff]  ;;  %v143_v10 = vld [vmem:[%s5324_s2 + $0x28] sm:$0xff] }
  0x16   :  { %4092 = vmatpush3.msk.msra.mxu1 %vm235_vm0, %v137_v3  ;;  %4072 = vmatprep.subr.mxu0 %v145_v7  ;;  %v85_v11 = vld [vmem:[%s5325_s4] sm:$0xff]  ;;  %v86_v12 = vld [vmem:[%s5325_s4 + $0x8] sm:$0xff] }
  0x17   :  { %4093 = vmatprep.subr.mxu1 %v136_v4  ;;  %4073 = vmatpush3.msra.mxu0 %v145_v7  ;;  %v134_v13 = vld [vmem:[%s5323_s1 + $0x48] sm:$0xff]  ;;  %v142_v14 = vld [vmem:[%s5324_s2 + $0x20] sm:$0xff] }
  0x18   :  { %105 = vperm.xlu0 %4395, %v84_v5   ;;  %93 = vperm.xlu1 %4396, %v82_v6  }
  0x19   :  { %4094 = vmatpush3.msra.mxu1 %v136_v4  ;;  %4074 = vmatprep.subr.mxu0 %v144_v8 }
  0x1a   :  { %4095 = vmatprep.subr.mxu1 %v135_v9  ;;  %4075 = vmatpush3.msra.mxu0 %v144_v8 }
  0x1b   :  { %4096 = vmatpush3.msra.mxu1 %v135_v9  ;;  %4076 = vmatprep.subr.mxu0 %v143_v10 }
  0x1c   :  { %30 = vsyncpa [#allocation3], 0  ;;  %114 = vperm.xlu0 %4395, %v85_v11   ;;  %117 = vperm.xlu1 %4396, %v86_v12   ;;  %v133_v15 = vld [vmem:[%s5323_s1 + $0x40] sm:$0xff]  ;;  %v141_v16 = vld [vmem:[%s5324_s2 + $0x18] sm:$0xff]  ;;  %s5326_s27 = sld [smem:[#allocation11_spill]]  ;;  %vm322_vm1 = vcmask 1041408   ;;  %v87_v29 = vlaneseq }
  0x1d   :  { %4097 = vmatprep.subr.mxu1 %v134_v13  ;;  %4077 = vmatpush3.msra.mxu0 %v143_v10  ;;  %v132_v17 = vld [vmem:[%s5323_s1 + $0x38] sm:$0xff]  ;;  %v140_v18 = vld [vmem:[%s5324_s2 + $0x10] sm:$0xff]  ;;  %v139_v20 = vld [vmem:[%s5324_s2 + $0x8] sm:$0xff]  ;;  %vm146_vm2 = vcmask 523264   ;;  %vm228_vm3 = vcmask 818176   ;;  %v4518_v33 = vmov 0.0  }
  0x1e   :  { %4098 = vmatpush3.msra.mxu1 %v134_v13  ;;  %4078 = vmatprep.subr.mxu0 %v142_v14  ;;  %v131_v19 = vld [vmem:[%s5323_s1 + $0x30] sm:$0xff]  ;;  %v130_v21 = vld [vmem:[%s5323_s1 + $0x28] sm:$0xff]  ;;  %v138_v22 = vld [vmem:[%s5324_s2] sm:$0xff]  ;;  %v88_v30 = vand.u32 127, %v87_v29  ;;  %vm315_vm8 = vcmask 15360   ;;  %vm405_vm11 = vcmask 261120  }
  0x1f   :  { %4099 = vmatprep.subr.mxu1 %v133_v15  ;;  %4079 = vmatpush3.msra.mxu0 %v142_v14  ;;  %v129_v23 = vld [vmem:[%s5323_s1 + $0x20] sm:$0xff]  ;;  %v128_v25 = vld [vmem:[%s5323_s1 + $0x18] sm:$0xff]  ;;  %v127_v26 = vld [vmem:[%s5323_s1 + $0x10] sm:$0xff]  ;;  %s5327_s3 = sld [smem:[#allocation14_spill]]  ;;  %vm553_vm12 = vcmask 64512   ;;  %s4519_s7 = smov 96  }
  0x20   :  { %4100 = vmatpush3.msra.mxu1 %v133_v15  ;;  %4080 = vmatprep.subr.mxu0 %v141_v16  ;;  %v126_v27 = vld [vmem:[%s5323_s1 + $0x8] sm:$0xff]  ;;  %v125_v28 = vld [vmem:[%s5323_s1] sm:$0xff]  ;;  %s5328_s9 = sld [smem:[#allocation12_spill]]  ;;  %vm641_vm13 = vcmask 130048   ;;  %s4520_s4 = smov 64   ;;  %vm3741_vm14 = vcmask 16384  }
  0x21   :  { %4101 = vmatprep.subr.mxu1 %v132_v17  ;;  %4081 = vmatpush3.msra.mxu0 %v141_v16  ;;  %s5329_s29 = sld [smem:[#allocation13_spill]]  ;;  %s4521_s28 = smov 88  }
  0x22   :  { %4102 = vmatpush3.msra.mxu1 %v132_v17  ;;  %4082 = vmatprep.subr.mxu0 %v140_v18  ;;  %v314_v24 = vld [vmem:[%s5326_s27] sm:$0x3]  ;;  %s5330_s6 = sld [smem:[#allocation8_spill]]  ;;  %s4522_s2 = smov 120  }
  0x23   :  { %4103 = vmatprep.subr.mxu1 %v131_v19  ;;  %4083 = vmatpush3.msra.mxu0 %v140_v18  ;;  %s4523_s0 = smov 56   ;;  %s5308_s30 = smov 112  }
  0x24   :  { %4104 = vmatpush3.msra.mxu1 %v131_v19  ;;  %4084 = vmatprep.subr.mxu0 %v139_v20  ;;  %s5306_s1 = smov 72   ;;  %s5304_s26 = smov 104  }
  0x25   :  { %4105 = vmatprep.subr.mxu1 %v130_v21  ;;  %4085 = vmatpush3.msra.mxu0 %v139_v20  ;;  %v454_v2 = vld [vmem:[%s5327_s3 + $0x18] sm:$0xff]  ;;  %v453_v3 = vld [vmem:[%s5327_s3 + $0x10] sm:$0xff]  ;;  %v452_v4 = vld [vmem:[%s5327_s3 + $0x8] sm:$0xff]  ;;  %s5302_s27 = smov 48   ;;  %s4530_s8 = smov [#allocation2]  }
  0x26   :  { %4106 = vmatpush3.msra.mxu1 %v130_v21  ;;  %4086 = vmatprep.subr.mxu0 %v138_v22  ;;  %v451_v5 = vld [vmem:[%s5327_s3] sm:$0xff] }
  0x27   :  { %4107 = vmatprep.subr.mxu1 %v129_v23  ;;  %4087 = vmatpush3.msra.mxu0 %v138_v22  ;;  %v3772_v13 = vld [vmem:[%s5328_s9] ss:$0 sm:$0xff]  ;;  %s5300_s9 = smov 40  }
  0x28   :  { %4108 = vmatpush3.msra.mxu1 %v129_v23  ;;  %4120 = vmatprep.subr.msk.mxu0 %vm322_vm1, %v314_v24  ;;  %v3773_v15 = vld [vmem:[%s5329_s29] ss:$0 sm:$0xff]  ;;  %s4524_s29 = smov 80  }
  0x29   :  { %4109 = vmatprep.subr.mxu1 %v128_v25  ;;  %v3774_v22 = vld [vmem:[%s5276_s10] ss:$0 sm:$0xff] }
  0x2a   :  { %4110 = vmatpush3.msra.mxu1 %v128_v25 }
  0x2b   :  { %4111 = vmatprep.subr.mxu1 %v127_v26 }
  0x2c   :  { %4112 = vmatpush3.msra.mxu1 %v127_v26 }
  0x2d   :  { %4113 = vmatprep.subr.mxu1 %v126_v27 }
  0x2e   :  { %4114 = vmatpush3.msra.mxu1 %v126_v27 }
  0x2f   :  { %4115 = vmatprep.subr.mxu1 %v125_v28 }
  0x30   :  { %4116 = vmatpush3.msra.mxu1 %v125_v28 }
  0x8e   :  { %v103_v31 = vpop.permute.xlu0 %102 }
  0x8f   :  { %v91_v32 = vpop.permute.xlu1 %90  ;;  %vm107_vm4 = vcmp.eq.s32.totalorder %v103_v31, %v88_v30 }
  0x90   :  { %vm95_vm5 = vcmp.eq.s32.totalorder %v91_v32, %v88_v30  ;;  %v3760_v34 = vsel %vm107_vm4, 1.0, %v4518_v33 }
  0x91   :  { %v3758_v35 = vsel %vm95_vm5, 1.0, %v4518_v33  ;;  %4088 = vmatprep.mubr.msk.f32.mxu0 %vm146_vm2, %v3760_v34 }
  0x92   :  { %4117 = vmatprep.mubr.msk.f32.mxu1 %vm228_vm3, %v3758_v35 }
  0x93   :  { %v106_v36 = vpop.permute.xlu0 %105  ;;  %v94_v37 = vpop.permute.xlu1 %93 }
  0x94   :  { %vm108_vm6 = vcmp.eq.s32.totalorder %v106_v36, %v88_v30  ;;  %vm96_vm7 = vcmp.eq.s32.totalorder %v94_v37, %v88_v30 }
  0x95   :  { %v3761_v38 = vsel %vm108_vm6, 1.0, %v4518_v33  ;;  %v3759_v39 = vsel %vm96_vm7, 1.0, %v4518_v33 }
  0x96   :  { %4089 = vmatmul.mubr.msk.f32.vlgmr.msra.gmra.mxu0 %vm146_vm2, %v3761_v38  ;;  %4118 = vmatmul.mubr.msk.f32.vlgmr.msra.gmra.mxu1 %vm228_vm3, %v3759_v39 }
  0x97   :  { %4121 = vmatpush3.msk.msra.mxu0 %vm322_vm1, %v314_v24  ;;  %v115_v40 = vpop.permute.xlu0 %114  ;;  %v118_v41 = vpop.permute.xlu1 %117 }
  0x98   :  { %vm119_vm9 = vcmp.eq.s32.totalorder %v115_v40, %v88_v30  ;;  %vm120_vm10 = vcmp.eq.s32.totalorder %v118_v41, %v88_v30  ;;  %4125 = vmatprep.subr.mxu0 %v454_v2  ;;  %v4801_v30 = vld [vmem:[%s5330_s6 + $0x8] sm:$0xff] }
  0x99   :  { %v3762_v42 = vsel %vm119_vm9, 1.0, %v4518_v33  ;;  %v3763_v43 = vsel %vm120_vm10, 1.0, %v4518_v33  ;;  %v4806_v33 = vld [vmem:[%s5330_s6] sm:$0xff] }
  0x9a   :  { %4122 = vmatprep.mubr.msk.f32.mxu0 %vm315_vm8, %v3762_v42 }
  0x9b   :  { %4123 = vmatmul.mubr.msk.f32.vlgmr.msra.gmra.mxu0 %vm315_vm8, %v3763_v43 }
  0x9c   :  { %4126 = vmatpush3.msra.mxu0 %v454_v2 }
  0x9d   :  { %4127 = vmatprep.subr.mxu0 %v453_v3 }
  0x9e   :  { %4128 = vmatpush3.msra.mxu0 %v453_v3 }
  0x9f   :  { %4129 = vmatprep.subr.mxu0 %v452_v4 }
  0xa0   :  { %4130 = vmatpush3.msra.mxu0 %v452_v4 }
  0xa1   :  { %4131 = vmatprep.subr.mxu0 %v451_v5 }
  0xa2   :  { %4132 = vmatpush3.msra.mxu0 %v451_v5 }
 0x156   :  { %v4090_v44 = vpop.f32.mrf.mxu0  ;;  %v4119_v45 = vpop.f32.mrf.mxu1 }
 0x157   :  { %v311_v48 = vadd.f32 %v4119_v45, %v4090_v44 }
 0x158   :  { %v219_v46 = vpop.f32.mrf.mxu0  ;;  %v305_v47 = vpop.f32.mrf.mxu1 }
 0x159   :  { %v306_v50 = vadd.f32 %v305_v47, %v219_v46 }
 0x15b   :  { %v4124_v49 = vpop.f32.mrf.mxu0 }
 0x15c   :  { %v402_v51 = vadd.f32 %v4124_v49, %v311_v48 }
 0x15d   :  { %v392_v52 = vpop.f32.mrf.mxu0 }
 0x15e   :  { %v401_v53 = vadd.f32 %v392_v52, %v306_v50  ;;  %v409_v54 = vsel %vm405_vm11, %v402_v51, 0.0 }
 0x15f   :  { %410 = vadd.xlane.f32.xlu1 %v409_v54 }
 0x160   :  { %v406_v55 = vsel %vm405_vm11, %v401_v53, 0.0 }
 0x161   :  { %407 = vadd.xlane.f32.xlu0 %v406_v55 }
 0x1e8   :  { %v411_v56 = vpop.xlane.xlu1 %410 }
 0x1e9   :  { %v414_v57 = vmul.f32 0.03125, %v411_v56 }
 0x1ea   :  { %v408_v58 = vpop.xlane.xlu0 %407 }
 0x1eb   :  { %v413_v59 = vmul.f32 0.03125, %v408_v58  ;;  %v416_v60 = vsub.f32 %v402_v51, %v414_v57 }
 0x1ed   :  { %v415_v61 = vsub.f32 %v401_v53, %v413_v59  ;;  %v418_v0 = vmul.f32 %v416_v60, %v416_v60 }
 0x1ef   :  { %v417_v62 = vmul.f32 %v415_v61, %v415_v61  ;;  %v422_v1 = vsel %vm405_vm11, %v418_v0, 0.0 }
 0x1f1   :  { %v419_v63 = vsel %vm405_vm11, %v417_v62, 0.0 }
 0x1f2   :  { %420 = vadd.xlane.f32.xlu0 %v419_v63 }
 0x1f6   :  { %423 = vadd.xlane.f32.xlu0 %v422_v1 }
 0x27b   :  { %v421_v6 = vpop.xlane.xlu0 %420 }
 0x27c   :  { %v425_v7 = vmul.f32 0.03125, %v421_v6 }
 0x27e   :  { %v427_v8 = vadd.f32 1e-12, %v425_v7  ;;  %v544_v7 = vld [vmem:[%s5277_s11 + $0x8] sm:$0xff] }
 0x27f   :  { %v424_v9 = vpop.xlane.xlu0 %423 }
 0x280   :  { %4397 = vrsqrt.f32 %v427_v8  ;;  %v426_v10 = vmul.f32 0.03125, %v424_v9 }
 0x282   :  { %v428_v11 = vadd.f32 1e-12, %v426_v10 }
 0x284   :  { %4399 = vrsqrt.f32 %v428_v11 }
 0x28d   :  { %v4398_v12 = vpop.eup %4397 }
 0x28e   :  { %v431_v14 = vmul.f32 %v4398_v12, %v415_v61 }
 0x290   :  { %v439_v16 = vmul.f32 %v3772_v13, %v431_v14 }
 0x291   :  { %v4400_v17 = vpop.eup %4399 }
 0x292   :  { %v432_v18 = vmul.f32 %v4400_v17, %v416_v60  ;;  %v4771_v19 = vadd.f32 %v3773_v15, %v439_v16 }
 0x294   :  { %v440_v20 = vmul.f32 %v3772_v13, %v432_v18  ;;  %4133 = vmatprep.mubr.msk.f32.mxu0 %vm405_vm11, %v4771_v19 }
 0x296   :  { %v4775_v21 = vadd.f32 %v3773_v15, %v440_v20 }
 0x298   :  { %4134 = vmatmul.mubr.msk.f32.vlgmr.msra.gmra.mxu0 %vm405_vm11, %v4775_v21 }
 0x358   :  { %v4135_v23 = vpop.f32.mrf.mxu0 }
 0x359   :  { %v4782_v24 = vadd.f32 %v4135_v23, %v3774_v22 }
 0x35a   :  { %v534_v25 = vpop.f32.mrf.mxu0 }
 0x35b   :  { %v4784_v26 = vadd.f32 %v3774_v22, %v534_v25  ;;  %551 = vrot.lane.b32.xlu1 %v4782_v24, %s4519_s7 }
 0x35d   :  { %549 = vrot.lane.b32.xlu0 %v4784_v26, %s4519_s7  ;;  %4140 = vmatprep.mubr.msk.f32.mxu1 %vm553_vm12, %v4784_v26 }
 0x3cd   :  { %v552_v27 = vpop.permute.xlu1 %551 }
 0x3ce   :  { %4136 = vmatprep.subr.msk.mxu1 %vm553_vm12, %v552_v27 }
 0x3cf   :  { %4137 = vmatpush3.xpose.msk.msra.mxu1 %vm553_vm12, %v552_v27  ;;  %v550_v28 = vpop.permute.xlu0 %549  ;;  %v543_v27 = vld [vmem:[%s5277_s11] sm:$0xff] }
 0x3d0   :  { %4138 = vmatprep.subr.msk.mxu1 %vm553_vm12, %v550_v28 }
 0x3d3   :  { %4139 = vmatpush3.xpose.msk.msra.mxu1 %vm553_vm12, %v550_v28 }
 0x3d4   :  { %4164 = vmatprep.subr.mxu1 %v544_v7 }
 0x3d6   :  { %4141 = vmatmul.mubr.msk.f32.vlgmr.msra.gmra.mxu1 %vm553_vm12, %v4782_v24 }
 0x3d7   :  { %4165 = vmatpush3.msra.mxu1 %v544_v7 }
 0x496   :  { %v4142_v29 = vpop.f32.mrf.mxu1 }
 0x497   :  { %v638_v31 = vmul.f32 0.35355338, %v4142_v29 }
 0x498   :  { %v628_v32 = vpop.f32.mrf.mxu1 }
 0x499   :  { %v637_v34 = vmul.f32 0.35355338, %v628_v32  ;;  %v640_v35 = vadd.f32 %v638_v31, %v4801_v30 }
 0x49b   :  { %v645_v36 = vsel %vm641_vm13, %v640_v35, -inf  ;;  %v639_v37 = vadd.f32 %v637_v34, %v4806_v33 }
 0x49c   :  { %646 = vmax.xlane.f32.xlu0 %v645_v36 }
 0x49d   :  { %v642_v38 = vsel %vm641_vm13, %v639_v37, -inf }
 0x49e   :  { %643 = vmax.xlane.f32.xlu1 %v642_v38 }
 0x4af   :  { %666 = vrot.lane.b32.xlu1 %v4782_v24, %s4520_s4 }
 0x4b3   :  { %757 = vrot.lane.b32.xlu1 %v4782_v24, %s4521_s28 }
 0x4b7   :  { %755 = vrot.lane.b32.xlu1 %v4784_v26, %s4521_s28 }
 0x525   :  { %v647_v39 = vpop.xlane.xlu0 %646 }
 0x526   :  { %v649_v40 = vsub.f32 %v640_v35, %v647_v39 }
 0x527   :  { %v644_v41 = vpop.xlane.xlu1 %643 }
 0x528   :  { %v652_v42 = vmul.f32 1.442695, %v649_v40  ;;  %v648_v43 = vsub.f32 %v639_v37, %v644_v41 }
 0x52a   :  { %4401 = vpow2.f32 %v652_v42  ;;  %v650_v44 = vmul.f32 1.442695, %v648_v43 }
 0x52b   :  { %v667_v45 = vpop.permute.xlu1 %666 }
 0x52c   :  { %4403 = vpow2.f32 %v650_v44  ;;  %4143 = vmatprep.subr.mxu0 %v667_v45 }
 0x52d   :  { %4144 = vmatpush3.msra.mxu0 %v667_v45 }
 0x52f   :  { %v758_v50 = vpop.permute.xlu1 %757 }
 0x533   :  { %v756_v51 = vpop.permute.xlu1 %755 }
 0x537   :  { %v4402_v46 = vpop.eup %4401 }
 0x538   :  { %v657_v47 = vsel %vm641_vm13, %v4402_v46, 0.0 }
 0x539   :  { %v4404_v48 = vpop.eup %4403  ;;  %658 = vadd.xlane.f32.xlu0 %v657_v47 }
 0x53a   :  { %v654_v49 = vsel %vm641_vm13, %v4404_v48, 0.0 }
 0x53b   :  { %655 = vadd.xlane.f32.xlu1 %v654_v49 }
 0x54c   :  { %753 = vrot.lane.b32.xlu1 %v4782_v24, %s4522_s2 }
 0x54f   :  { %664 = vrot.lane.b32.xlu0 %v4784_v26, %s4520_s4 }
 0x553   :  { %751 = vrot.lane.b32.xlu0 %v4784_v26, %s4522_s2 }
 0x5c2   :  { %v659_v52 = vpop.xlane.xlu0 %658 }
 0x5c3   :  { %4405 = vrcp.f32 %v659_v52 }
 0x5c4   :  { %v656_v53 = vpop.xlane.xlu1 %655 }
 0x5c5   :  { %4407 = vrcp.f32 %v656_v53 }
 0x5c6   :  { %v665_v54 = vpop.permute.xlu0 %664 }
 0x5c7   :  { %4145 = vmatprep.subr.mxu0 %v665_v54 }
 0x5c8   :  { %4146 = vmatpush3.msra.mxu0 %v665_v54  ;;  %v754_v60 = vpop.permute.xlu1 %753 }
 0x5c9   :  { %4150 = vmatprep.subr.msk.mxu0 %vm553_vm12, %v758_v50 }
 0x5ca   :  { %v752_v59 = vpop.permute.xlu0 %751 }
 0x5d0   :  { %v4406_v55 = vpop.eup %4405 }
 0x5d1   :  { %v663_v58 = vmul.f32 %v4406_v55, %v4402_v46 }
 0x5d2   :  { %v4408_v56 = vpop.eup %4407 }
 0x5d3   :  { %v662_v57 = vmul.f32 %v4408_v56, %v4404_v48 }
 0x5d5   :  { %4147 = vmatprep.mubr.msk.f32.mxu0 %vm641_vm13, %v662_v57 }
 0x5d6   :  { %4148 = vmatmul.mubr.msk.f32.vlgmr.msra.gmra.mxu0 %vm641_vm13, %v663_v58 }
 0x5d7   :  { %4151 = vmatpush3.xpose.msk.msra.mxu0 %vm553_vm12, %v758_v50  ;;  %4154 = vmatprep.mubr.msk.f32.mxu0 %vm553_vm12, %v752_v59 }
 0x5d8   :  { %4152 = vmatprep.subr.msk.mxu0 %vm553_vm12, %v756_v51 }
 0x5db   :  { %4153 = vmatpush3.xpose.msk.msra.mxu0 %vm553_vm12, %v756_v51 }
 0x5de   :  { %4155 = vmatmul.mubr.msk.f32.vlgmr.msra.gmra.mxu0 %vm553_vm12, %v754_v60 }
 0x696   :  { %v4834_v61 = vpop.f32.mrf.mxu0 }
 0x698   :  { %v4836_v62 = vpop.f32.mrf.mxu0 }
 0x69e   :  { %v4156_v63 = vpop.f32.mrf.mxu0 }
 0x69f   :  { %v843_v0 = vmul.f32 0.35355338, %v4156_v63 }
 0x6a0   :  { %v833_v1 = vpop.f32.mrf.mxu0 }
 0x6a1   :  { %v842_v2 = vmul.f32 0.35355338, %v833_v1  ;;  %v845_v3 = vadd.f32 %v843_v0, %v4801_v30 }
 0x6a3   :  { %v849_v4 = vsel %vm641_vm13, %v845_v3, -inf  ;;  %v844_v5 = vadd.f32 %v842_v2, %v4806_v33 }
 0x6a4   :  { %850 = vmax.xlane.f32.xlu1 %v849_v4 }
 0x6a5   :  { %v846_v6 = vsel %vm641_vm13, %v844_v5, -inf }
 0x6a6   :  { %847 = vmax.xlane.f32.xlu0 %v846_v6 }
 0x6b5   :  { %870 = vrot.lane.b32.xlu1 %v4782_v24, %s4523_s0 }
 0x6b9   :  { %1123 = vrot.lane.b32.xlu1 %v4782_v24, %s4524_s29 }
 0x6bd   :  { %1121 = vrot.lane.b32.xlu1 %v4784_v26, %s4524_s29 }
 0x6c1   :  { %1119 = vrot.lane.b32.xlu1 %v4782_v24, %s5308_s30 }
 0x6c5   :  { %1408 = vrot.lane.b32.xlu1 %v4784_v26, %s5306_s1 }
 0x6c9   :  { %1406 = vrot.lane.b32.xlu1 %v4782_v24, %s5304_s26 }
 0x72d   :  { %v851_v8 = vpop.xlane.xlu1 %850 }
 0x72e   :  { %v853_v9 = vsub.f32 %v845_v3, %v851_v8 }
 0x72f   :  { %v848_v10 = vpop.xlane.xlu0 %847 }
 0x730   :  { %v856_v11 = vmul.f32 1.442695, %v853_v9  ;;  %v852_v12 = vsub.f32 %v844_v5, %v848_v10 }
 0x731   :  { %v871_v13 = vpop.permute.xlu1 %870 }
 0x732   :  { %4409 = vpow2.f32 %v856_v11  ;;  %v854_v14 = vmul.f32 1.442695, %v852_v12  ;;  %4157 = vmatprep.subr.mxu0 %v871_v13 }
 0x733   :  { %4158 = vmatpush3.msra.mxu0 %v871_v13 }
 0x734   :  { %4411 = vpow2.f32 %v854_v14 }
 0x735   :  { %v1124_v15 = vpop.permute.xlu1 %1123 }
 0x736   :  { %4174 = vmatprep.subr.msk.mxu1 %vm553_vm12, %v1124_v15 }
 0x739   :  { %v1122_v36 = vpop.permute.xlu1 %1121 }
 0x73d   :  { %v1120_v39 = vpop.permute.xlu1 %1119 }
 0x73f   :  { %v4410_v16 = vpop.eup %4409 }
 0x740   :  { %v861_v17 = vsel %vm641_vm13, %v4410_v16, 0.0 }
 0x741   :  { %v4412_v18 = vpop.eup %4411  ;;  %862 = vadd.xlane.f32.xlu0 %v861_v17  ;;  %v1409_v41 = vpop.permute.xlu1 %1408 }
 0x742   :  { %v858_v20 = vsel %vm641_vm13, %v4412_v18, 0.0 }
 0x745   :  { %859 = vadd.xlane.f32.xlu0 %v858_v20  ;;  %v1407_v42 = vpop.permute.xlu1 %1406 }
 0x75b   :  { %868 = vrot.lane.b32.xlu0 %v4784_v26, %s4523_s0 }
 0x75f   :  { %1117 = vrot.lane.b32.xlu0 %v4784_v26, %s5308_s30 }
 0x763   :  { %1410 = vrot.lane.b32.xlu0 %v4782_v24, %s5306_s1  ;;  %s5331_s1 = sld [smem:[#allocation15_spill]] }
 0x767   :  { %1404 = vrot.lane.b32.xlu0 %v4784_v26, %s5304_s26 }
 0x7ca   :  { %v863_v22 = vpop.xlane.xlu0 %862 }
 0x7cb   :  { %4413 = vrcp.f32 %v863_v22 }
 0x7ce   :  { %v860_v23 = vpop.xlane.xlu0 %859 }
 0x7cf   :  { %4415 = vrcp.f32 %v860_v23 }
 0x7d2   :  { %v869_v25 = vpop.permute.xlu0 %868 }
 0x7d3   :  { %4159 = vmatprep.subr.mxu0 %v869_v25 }
 0x7d4   :  { %4160 = vmatpush3.msra.mxu0 %v869_v25 }
 0x7d5   :  { %4169 = vmatprep.subr.mxu0 %v543_v27 }
 0x7d6   :  { %v1118_v34 = vpop.permute.xlu0 %1117 }
 0x7d8   :  { %v4414_v28 = vpop.eup %4413 }
 0x7d9   :  { %v867_v32 = vmul.f32 %v4414_v28, %v4410_v16  ;;  %v545_v16 = vld [vmem:[%s5277_s11 + $0x10] sm:$0xff] }
 0x7da   :  { %v1411_v38 = vpop.permute.xlu0 %1410 }
 0x7dc   :  { %v4416_v29 = vpop.eup %4415 }
 0x7dd   :  { %v866_v31 = vmul.f32 %v4416_v29, %v4412_v18 }
 0x7de   :  { %v1405_v40 = vpop.permute.xlu0 %1404 }
 0x7df   :  { %4161 = vmatprep.mubr.msk.f32.mxu0 %vm641_vm13, %v866_v31 }
 0x7e0   :  { %4162 = vmatmul.mubr.msk.f32.vlgmr.msra.gmra.mxu0 %vm641_vm13, %v867_v32 }
 0x7e1   :  { %4171 = vmatprep.mubr.msk.f32.mxu0 %vm553_vm12, %v4836_v62  ;;  %4170 = vmatpush3.msra.mxu0 %v543_v27 }
 0x7e4   :  { %4172 = vmatmul.mubr.msk.f32.vlgmr.msra.gmra.mxu0 %vm553_vm12, %v4834_v61 }
 0x8a0   :  { %v4163_v35 = vpop.f32.mrf.mxu0 }
 0x8a2   :  { %v946_v37 = vpop.f32.mrf.mxu0 }
 0x8a3   :  { %4166 = vmatprep.mubr.msk.f32.mxu1 %vm553_vm12, %v946_v37 }
 0x8a4   :  { %4167 = vmatmul.mubr.msk.f32.vlgmr.msra.gmra.mxu1 %vm553_vm12, %v4163_v35  ;;  %v4173_v32 = vpop.f32.mrf.mxu0 }
 0x8a5   :  { %4175 = vmatpush3.xpose.msk.msra.mxu1 %vm553_vm12, %v1124_v15  ;;  %4178 = vmatprep.mubr.msk.f32.mxu1 %vm553_vm12, %v1118_v34 }
 0x8a6   :  { %4176 = vmatprep.subr.msk.mxu1 %vm553_vm12, %v1122_v36  ;;  %v1108_v34 = vpop.f32.mrf.mxu0 }
 0x8a9   :  { %4177 = vmatpush3.xpose.msk.msra.mxu1 %vm553_vm12, %v1122_v36 }
 0x8aa   :  { %4193 = vmatprep.subr.msk.mxu1 %vm553_vm12, %v1411_v38 }
 0x8ac   :  { %4179 = vmatmul.mubr.msk.f32.vlgmr.msra.gmra.mxu1 %vm553_vm12, %v1120_v39 }
 0x8ad   :  { %4194 = vmatpush3.xpose.msk.msra.mxu1 %vm553_vm12, %v1411_v38  ;;  %4197 = vmatprep.mubr.msk.f32.mxu1 %vm553_vm12, %v1405_v40 }
 0x8ae   :  { %4195 = vmatprep.subr.msk.mxu1 %vm553_vm12, %v1409_v41 }
 0x8b1   :  { %4196 = vmatpush3.xpose.msk.msra.mxu1 %vm553_vm12, %v1409_v41 }
 0x8b4   :  { %4198 = vmatmul.mubr.msk.f32.vlgmr.msra.gmra.mxu1 %vm553_vm12, %v1407_v42  ;;  %v546_v42 = vld [vmem:[%s5277_s11 + $0x18] sm:$0xff] }
 0x964   :  { %v4890_v43 = vpop.f32.mrf.mxu1 }
 0x966   :  { %v4892_v44 = vpop.f32.mrf.mxu1 }
 0x96c   :  { %v4180_v45 = vpop.f32.mrf.mxu1 }
 0x96d   :  { %v1209_v46 = vmul.f32 0.35355338, %v4180_v45  ;;  %v1114_v45 = vadd.f32 %v4173_v32, %v4890_v43  ;;  %v1861_v32 = vld [vmem:[%s5283_s17 + $0x28] sm:$0xff] }
 0x96e   :  { %v1199_v47 = vpop.f32.mrf.mxu1 }
 0x96f   :  { %v1208_v48 = vmul.f32 0.35355338, %v1199_v47  ;;  %v1211_v49 = vadd.f32 %v1209_v46, %v4801_v30  ;;  %v1109_v47 = vadd.f32 %v1108_v34, %v4892_v44  ;;  %v1860_v34 = vld [vmem:[%s5283_s17 + $0x20] sm:$0xff] }
 0x971   :  { %v1215_v50 = vsel %vm641_vm13, %v1211_v49, -inf  ;;  %v1210_v51 = vadd.f32 %v1208_v48, %v4806_v33 }
 0x972   :  { %1216 = vmax.xlane.f32.xlu1 %v1215_v50 }
 0x973   :  { %v1212_v52 = vsel %vm641_vm13, %v1210_v51, -inf }
 0x974   :  { %1213 = vmax.xlane.f32.xlu0 %v1212_v52  ;;  %v4199_v53 = vpop.f32.mrf.mxu1 }
 0x975   :  { %v1496_v8 = vmul.f32 0.35355338, %v4199_v53 }
 0x976   :  { %v1486_v54 = vpop.f32.mrf.mxu1 }
 0x977   :  { %v1495_v55 = vmul.f32 0.35355338, %v1486_v54  ;;  %v1498_v11 = vadd.f32 %v1496_v8, %v4801_v30  ;;  %v3809_v54 = vld [vmem:[%s5278_s12] ss:$0 sm:$0xff]  ;;  %v1747_v8 = vld [vmem:[%s5281_s15 + $0x8] sm:$0xff] }
 0x979   :  { %v1497_v56 = vadd.f32 %v1495_v55, %v4806_v33  ;;  %v1502_v12 = vsel %vm641_vm13, %v1498_v11, -inf }
 0x97b   :  { %v1499_v57 = vsel %vm641_vm13, %v1497_v56, -inf }
 0x983   :  { %1236 = vrot.lane.b32.xlu1 %v4782_v24, %s5302_s27 }
 0x9a7   :  { %1500 = vmax.xlane.f32.xlu1 %v1499_v57 }
 0x9fb   :  { %v1217_v58 = vpop.xlane.xlu1 %1216 }
 0x9fc   :  { %v1219_v59 = vsub.f32 %v1211_v49, %v1217_v58 }
 0x9fd   :  { %v1214_v60 = vpop.xlane.xlu0 %1213 }
 0x9fe   :  { %v1222_v61 = vmul.f32 1.442695, %v1219_v59  ;;  %v1218_v62 = vsub.f32 %v1210_v51, %v1214_v60 }
 0x9ff   :  { %v1237_v63 = vpop.permute.xlu1 %1236 }
 0xa00   :  { %4417 = vpow2.f32 %v1222_v61  ;;  %v1220_v0 = vmul.f32 1.442695, %v1218_v62  ;;  %4181 = vmatprep.subr.mxu0 %v1237_v63 }
 0xa01   :  { %4182 = vmatpush3.msra.mxu0 %v1237_v63 }
 0xa02   :  { %4419 = vpow2.f32 %v1220_v0 }
 0xa0d   :  { %v4418_v1 = vpop.eup %4417 }
 0xa0e   :  { %v1227_v2 = vsel %vm641_vm13, %v4418_v1, 0.0 }
 0xa0f   :  { %v4420_v3 = vpop.eup %4419  ;;  %1228 = vadd.xlane.f32.xlu0 %v1227_v2 }
 0xa10   :  { %v1224_v4 = vsel %vm641_vm13, %v4420_v3, 0.0 }
 0xa13   :  { %1225 = vadd.xlane.f32.xlu0 %v1224_v4 }
 0xa29   :  { %1234 = vrot.lane.b32.xlu0 %v4784_v26, %s5302_s27 }
 0xa30   :  { %v1501_v5 = vpop.xlane.xlu1 %1500 }
 0xa31   :  { %v1505_v6 = vsub.f32 %v1497_v56, %v1501_v5 }
 0xa33   :  { %v1507_v7 = vmul.f32 1.442695, %v1505_v6 }
 0xa35   :  { %4421 = vpow2.f32 %v1507_v7  ;;  %v1748_v7 = vld [vmem:[%s5281_s15 + $0x10] sm:$0xff] }
 0xa42   :  { %v4422_v9 = vpop.eup %4421 }
 0xa43   :  { %v1511_v10 = vsel %vm641_vm13, %v4422_v9, 0.0 }
 0xa44   :  { %1512 = vadd.xlane.f32.xlu1 %v1511_v10 }
 0xa48   :  { %1503 = vmax.xlane.f32.xlu0 %v1502_v12 }
 0xa55   :  { %1523 = vrot.lane.b32.xlu1 %v4782_v24, %s5300_s9 }
 0xa98   :  { %v1229_v13 = vpop.xlane.xlu0 %1228 }
 0xa99   :  { %4423 = vrcp.f32 %v1229_v13 }
 0xa9c   :  { %v1226_v14 = vpop.xlane.xlu0 %1225 }
 0xa9d   :  { %4425 = vrcp.f32 %v1226_v14 }
 0xaa0   :  { %v1235_v15 = vpop.permute.xlu0 %1234 }
 0xaa1   :  { %4183 = vmatprep.subr.mxu0 %v1235_v15 }
 0xaa2   :  { %4184 = vmatpush3.msra.mxu0 %v1235_v15 }
 0xaa3   :  { %4188 = vmatprep.subr.mxu0 %v545_v16 }
 0xaa6   :  { %v4424_v17 = vpop.eup %4423 }
 0xaa7   :  { %v1233_v22 = vmul.f32 %v4424_v17, %v4418_v1  ;;  %v3810_v17 = vld [vmem:[%s5279_s13] ss:$0 sm:$0xff] }
 0xaaa   :  { %v4426_v18 = vpop.eup %4425 }
 0xaab   :  { %v1232_v20 = vmul.f32 %v4426_v18, %v4420_v3 }
 0xaad   :  { %4185 = vmatprep.mubr.msk.f32.mxu0 %vm641_vm13, %v1232_v20 }
 0xaae   :  { %4186 = vmatmul.mubr.msk.f32.vlgmr.msra.gmra.mxu0 %vm641_vm13, %v1233_v22 }
 0xaaf   :  { %4189 = vmatpush3.msra.mxu0 %v545_v16 }
 0xacd   :  { %v1513_v24 = vpop.xlane.xlu1 %1512 }
 0xad1   :  { %v1524_v23 = vpop.permute.xlu1 %1523  ;;  %v1504_v25 = vpop.xlane.xlu0 %1503 }
 0xad2   :  { %v1506_v27 = vsub.f32 %v1498_v11, %v1504_v25  ;;  %4200 = vmatprep.subr.mxu0 %v1524_v23 }
 0xad4   :  { %v1509_v28 = vmul.f32 1.442695, %v1506_v27 }
 0xad6   :  { %4427 = vpow2.f32 %v1509_v28 }
 0xad7   :  { %4429 = vrcp.f32 %v1513_v24 }
 0xae3   :  { %v4428_v29 = vpop.eup %4427 }
 0xae4   :  { %v1514_v31 = vsel %vm641_vm13, %v4428_v29, 0.0  ;;  %v4430_v35 = vpop.eup %4429 }
 0xae5   :  { %1515 = vadd.xlane.f32.xlu0 %v1514_v31  ;;  %v1519_v39 = vmul.f32 %v4430_v35, %v4422_v9  ;;  %v1746_v9 = vld [vmem:[%s5281_s15] sm:$0xff]  ;;  %v1862_v31 = vld [vmem:[%s5283_s17 + $0x30] sm:$0xff]  ;;  %v1859_v35 = vld [vmem:[%s5283_s17 + $0x18] sm:$0xff] }
 0xafb   :  { %1521 = vrot.lane.b32.xlu0 %v4784_v26, %s5300_s9 }
 0xb6e   :  { %v4187_v36 = vpop.f32.mrf.mxu0  ;;  %v1516_v37 = vpop.xlane.xlu0 %1515 }
 0xb6f   :  { %4431 = vrcp.f32 %v1516_v37  ;;  %v1857_v37 = vld [vmem:[%s5283_s17 + $0x8] sm:$0xff] }
 0xb70   :  { %v1312_v38 = vpop.f32.mrf.mxu0 }
 0xb71   :  { %4190 = vmatprep.mubr.msk.f32.mxu0 %vm553_vm12, %v1312_v38  ;;  %v1856_v38 = vld [vmem:[%s5283_s17] sm:$0xff] }
 0xb72   :  { %4191 = vmatmul.mubr.msk.f32.vlgmr.msra.gmra.mxu0 %vm553_vm12, %v4187_v36  ;;  %v1522_v40 = vpop.permute.xlu0 %1521  ;;  %v1858_v36 = vld [vmem:[%s5283_s17 + $0x10] sm:$0xff] }
 0xb73   :  { %4201 = vmatpush3.msra.mxu0 %v1524_v23  ;;  %4204 = vmatprep.mubr.msk.f32.mxu0 %vm641_vm13, %v1519_v39  ;;  %v3811_v23 = vld [vmem:[%s5280_s14] ss:$0 sm:$0xff] }
 0xb74   :  { %4202 = vmatprep.subr.mxu0 %v1522_v40  ;;  %v3812_v39 = vld [vmem:[%s5282_s16] ss:$0 sm:$0xff] }
 0xb75   :  { %4203 = vmatpush3.msra.mxu0 %v1522_v40 }
 0xb76   :  { %4207 = vmatprep.subr.mxu0 %v546_v42 }
 0xb7c   :  { %v4432_v26 = vpop.eup %4431 }
 0xb7d   :  { %v1520_v41 = vmul.f32 %v4432_v26, %v4428_v29  ;;  %v1863_v29 = vld [vmem:[%s5283_s17 + $0x38] sm:$0xff] }
 0xb7f   :  { %4205 = vmatmul.mubr.msk.f32.vlgmr.msra.gmra.mxu0 %vm641_vm13, %v1520_v41 }
 0xb80   :  { %4208 = vmatpush3.msra.mxu0 %v546_v42 }
 0xb81   :  { %4223 = vmatprep.subr.mxu0 %v1863_v29 }
 0xc32   :  { %v4192_v46 = vpop.f32.mrf.mxu0 }
 0xc33   :  { %v1403_v48 = vadd.f32 %v4192_v46, %v1114_v45 }
 0xc34   :  { %v1393_v49 = vpop.f32.mrf.mxu0 }
 0xc35   :  { %v1402_v50 = vadd.f32 %v1393_v49, %v1109_v47 }
 0xc3f   :  { %v4206_v51 = vpop.f32.mrf.mxu0 }
 0xc41   :  { %v1599_v52 = vpop.f32.mrf.mxu0 }
 0xc42   :  { %4209 = vmatprep.mubr.msk.f32.mxu0 %vm553_vm12, %v1599_v52 }
 0xc43   :  { %4210 = vmatmul.mubr.msk.f32.vlgmr.msra.gmra.mxu0 %vm553_vm12, %v4206_v51 }
 0xc44   :  { %4224 = vmatpush3.msra.mxu0 %v1863_v29 }
 0xc45   :  { %4225 = vmatprep.subr.mxu0 %v1862_v31 }
 0xc46   :  { %4226 = vmatpush3.msra.mxu0 %v1862_v31 }
 0xc47   :  { %4227 = vmatprep.subr.mxu0 %v1861_v32 }
 0xc48   :  { %4228 = vmatpush3.msra.mxu0 %v1861_v32 }
 0xc49   :  { %4229 = vmatprep.subr.mxu0 %v1860_v34 }
 0xc4a   :  { %4230 = vmatpush3.msra.mxu0 %v1860_v34 }
 0xc4b   :  { %4231 = vmatprep.subr.mxu0 %v1859_v35 }
 0xc4c   :  { %4232 = vmatpush3.msra.mxu0 %v1859_v35  ;;  %v3819_v35 = vld [vmem:[%s5331_s1] ss:$0 sm:$0xff] }
 0xc4d   :  { %4233 = vmatprep.subr.mxu0 %v1858_v36 }
 0xc4e   :  { %4234 = vmatpush3.msra.mxu0 %v1858_v36 }
 0xc4f   :  { %4235 = vmatprep.subr.mxu0 %v1857_v37 }
 0xc50   :  { %4236 = vmatpush3.msra.mxu0 %v1857_v37 }
 0xc51   :  { %4237 = vmatprep.subr.mxu0 %v1856_v38 }
 0xc52   :  { %4238 = vmatpush3.msra.mxu0 %v1856_v38 }
 0xd03   :  { %v4211_v53 = vpop.f32.mrf.mxu0 }
 0xd04   :  { %v1690_v55 = vadd.f32 %v4211_v53, %v1403_v48 }
 0xd05   :  { %v1680_v56 = vpop.f32.mrf.mxu0 }
 0xd06   :  { %v1699_v43 = vadd.f32 %v3809_v54, %v1690_v55  ;;  %v1689_v57 = vadd.f32 %v1680_v56, %v1402_v50 }
 0xd08   :  { %v1698_v58 = vadd.f32 %v3809_v54, %v1689_v57  ;;  %v1701_v44 = vadd.f32 %v1699_v43, %v4775_v21 }
 0xd0a   :  { %v1707_v59 = vsel %vm405_vm11, %v1701_v44, 0.0  ;;  %v1700_v60 = vadd.f32 %v1698_v58, %v4771_v19  ;;  %v1749_v19 = vld [vmem:[%s5281_s15 + $0x18] sm:$0xff] }
 0xd0b   :  { %1708 = vadd.xlane.f32.xlu0 %v1707_v59  ;;  %4212 = vmatprep.subr.mxu1 %v1749_v19 }
 0xd0c   :  { %v1704_v61 = vsel %vm405_vm11, %v1700_v60, 0.0  ;;  %4213 = vmatpush3.msra.mxu1 %v1749_v19 }
 0xd0d   :  { %1705 = vadd.xlane.f32.xlu1 %v1704_v61  ;;  %4214 = vmatprep.subr.mxu1 %v1748_v7  ;;  %v3815_v61 = vld [vmem:[%s5284_s18] ss:$0 sm:$0xff] }
 0xd0e   :  { %4215 = vmatpush3.msra.mxu1 %v1748_v7 }
 0xd0f   :  { %4216 = vmatprep.subr.mxu1 %v1747_v8 }
 0xd10   :  { %4217 = vmatpush3.msra.mxu1 %v1747_v8 }
 0xd11   :  { %4218 = vmatprep.subr.mxu1 %v1746_v9 }
 0xd12   :  { %4219 = vmatpush3.msra.mxu1 %v1746_v9 }
 0xd94   :  { %v1709_v62 = vpop.xlane.xlu0 %1708 }
 0xd95   :  { %v1711_v63 = vmul.f32 0.03125, %v1709_v62 }
 0xd96   :  { %v1706_v0 = vpop.xlane.xlu1 %1705 }
 0xd97   :  { %v1713_v1 = vsub.f32 %v1701_v44, %v1711_v63  ;;  %v1710_v2 = vmul.f32 0.03125, %v1706_v0 }
 0xd99   :  { %v1712_v3 = vsub.f32 %v1700_v60, %v1710_v2  ;;  %v1715_v4 = vmul.f32 %v1713_v1, %v1713_v1 }
 0xd9b   :  { %v1719_v5 = vsel %vm405_vm11, %v1715_v4, 0.0  ;;  %v1714_v6 = vmul.f32 %v1712_v3, %v1712_v3 }
 0xd9c   :  { %1720 = vadd.xlane.f32.xlu0 %v1719_v5 }
 0xd9d   :  { %v1716_v21 = vsel %vm405_vm11, %v1714_v6, 0.0 }
 0xd9e   :  { %1717 = vadd.xlane.f32.xlu1 %v1716_v21 }
 0xe25   :  { %v1721_v10 = vpop.xlane.xlu0 %1720 }
 0xe26   :  { %v1723_v11 = vmul.f32 0.03125, %v1721_v10 }
 0xe27   :  { %v1718_v12 = vpop.xlane.xlu1 %1717 }
 0xe28   :  { %v1725_v13 = vadd.f32 1e-12, %v1723_v11  ;;  %v1722_v14 = vmul.f32 0.03125, %v1718_v12 }
 0xe2a   :  { %4433 = vrsqrt.f32 %v1725_v13  ;;  %v1724_v15 = vadd.f32 1e-12, %v1722_v14  ;;  %v3823_v14 = vld [vmem:[%s5327_s3 + $0x38] sm:$0xff] }
 0xe2b   :  { %4242 = vmatprep.subr.mxu1 %v3823_v14 }
 0xe2c   :  { %4435 = vrsqrt.f32 %v1724_v15  ;;  %v3822_v15 = vld [vmem:[%s5327_s3 + $0x30] sm:$0xff] }
 0xe37   :  { %v4434_v16 = vpop.eup %4433 }
 0xe38   :  { %v1729_v18 = vmul.f32 %v4434_v16, %v1713_v1  ;;  %v3821_v16 = vld [vmem:[%s5327_s3 + $0x28] sm:$0xff] }
 0xe39   :  { %v4436_v20 = vpop.eup %4435 }
 0xe3a   :  { %v1728_v22 = vmul.f32 %v4436_v20, %v1712_v3  ;;  %v1737_v24 = vmul.f32 %v3810_v17, %v1729_v18 }
 0xe3c   :  { %v1736_v25 = vmul.f32 %v3810_v17, %v1728_v22  ;;  %v1745_v28 = vadd.f32 %v3811_v23, %v1737_v24  ;;  %v3820_v17 = vld [vmem:[%s5327_s3 + $0x20] sm:$0xff]  ;;  %s5335_s3 = smov 48  }
 0xe3e   :  { %v1744_v27 = vadd.f32 %v3811_v23, %v1736_v25 }
 0xe40   :  { %4220 = vmatprep.mubr.msk.f32.mxu1 %vm405_vm11, %v1744_v27 }
 0xe41   :  { %4221 = vmatmul.mubr.msk.f32.vlgmr.msra.gmra.mxu1 %vm405_vm11, %v1745_v28 }
 0xe42   :  { %4243 = vmatpush3.msra.mxu1 %v3823_v14 }
 0xe43   :  { %4244 = vmatprep.subr.mxu1 %v3822_v15 }
 0xe44   :  { %4245 = vmatpush3.msra.mxu1 %v3822_v15 }
 0xe45   :  { %4246 = vmatprep.subr.mxu1 %v3821_v16 }
 0xe46   :  { %4247 = vmatpush3.msra.mxu1 %v3821_v16 }
 0xe47   :  { %4248 = vmatprep.subr.mxu1 %v3820_v17 }
 0xe48   :  { %4249 = vmatpush3.msra.mxu1 %v3820_v17 }
 0xf01   :  { %v4222_v40 = vpop.f32.mrf.mxu1 }
 0xf02   :  { %v1835_v26 = vadd.f32 %v4222_v40, %v3812_v39 }
 0xf03   :  { %v1829_v41 = vpop.f32.mrf.mxu1 }
 0xf04   :  { %v1839_v42 = vmul.f32 %v1835_v26, %v1835_v26  ;;  %v1830_v45 = vadd.f32 %v3812_v39, %v1829_v41  ;;  %v3825_v39 = vld [vmem:[%s5276_s10 + $0x1] ss:$0 sm:$0xff] }
 0xf06   :  { %v1841_v46 = vmul.f32 %v1839_v42, %v1835_v26  ;;  %v1838_v47 = vmul.f32 %v1830_v45, %v1830_v45 }
 0xf08   :  { %v1843_v48 = vmul.f32 0.044715, %v1841_v46  ;;  %v1840_v49 = vmul.f32 %v1838_v47, %v1830_v45 }
 0xf0a   :  { %v1845_v50 = vadd.f32 %v1843_v48, %v1835_v26  ;;  %v1842_v51 = vmul.f32 0.044715, %v1840_v49 }
 0xf0c   :  { %v1847_v52 = vmul.f32 0.7978846, %v1845_v50  ;;  %v1844_v53 = vadd.f32 %v1842_v51, %v1830_v45 }
 0xf0e   :  { %4437 = vtanh.f32 %v1847_v52  ;;  %v1846_v54 = vmul.f32 0.7978846, %v1844_v53 }
 0xf10   :  { %4439 = vtanh.f32 %v1846_v54 }
 0xf1b   :  { %v4438_v55 = vpop.eup %4437 }
 0xf1c   :  { %v1851_v56 = vadd.f32 1.0, %v4438_v55 }
 0xf1d   :  { %v4440_v43 = vpop.eup %4439 }
 0xf1e   :  { %v1850_v57 = vadd.f32 1.0, %v4440_v43  ;;  %v1853_v58 = vmul.f32 0.5, %v1851_v56 }
 0xf20   :  { %v1852_v44 = vmul.f32 0.5, %v1850_v57  ;;  %v1855_v60 = vmul.f32 %v1853_v58, %v1835_v26 }
 0xf22   :  { %v1854_v59 = vmul.f32 %v1852_v44, %v1830_v45 }
 0xf24   :  { %4239 = vmatprep.mubr.msk.f32.mxu0 %vm146_vm2, %v1854_v59 }
 0xf25   :  { %4240 = vmatmul.mubr.msk.f32.vlgmr.msra.gmra.mxu0 %vm146_vm2, %v1855_v60 }
 0xfe5   :  { %v4241_v62 = vpop.f32.mrf.mxu0 }
 0xfe6   :  { %v1949_v63 = vadd.f32 %v4241_v62, %v3815_v61 }
 0xfe7   :  { %v1943_v0 = vpop.f32.mrf.mxu0 }
 0xfe8   :  { %v1944_v1 = vadd.f32 %v3815_v61, %v1943_v0  ;;  %v1953_v2 = vadd.f32 %v1949_v63, %v1745_v28  ;;  %v3818_v28 = vld [vmem:[%s5285_s19] ss:$0 sm:$0xff] }
 0xfea   :  { %v1959_v3 = vsel %vm405_vm11, %v1953_v2, 0.0  ;;  %v1952_v4 = vadd.f32 %v1944_v1, %v1744_v27 }
 0xfeb   :  { %1960 = vadd.xlane.f32.xlu0 %v1959_v3 }
 0xfec   :  { %v1956_v5 = vsel %vm405_vm11, %v1952_v4, 0.0 }
 0xfed   :  { %1957 = vadd.xlane.f32.xlu1 %v1956_v5 }
0x1074   :  { %v1961_v6 = vpop.xlane.xlu0 %1960 }
0x1075   :  { %v1963_v21 = vmul.f32 0.03125, %v1961_v6 }
0x1076   :  { %v1958_v19 = vpop.xlane.xlu1 %1957 }
0x1077   :  { %v1965_v7 = vsub.f32 %v1953_v2, %v1963_v21  ;;  %v1962_v8 = vmul.f32 0.03125, %v1958_v19 }
0x1079   :  { %v1964_v9 = vsub.f32 %v1952_v4, %v1962_v8  ;;  %v1967_v10 = vmul.f32 %v1965_v7, %v1965_v7 }
0x107b   :  { %v1971_v11 = vsel %vm405_vm11, %v1967_v10, 0.0  ;;  %v1966_v12 = vmul.f32 %v1964_v9, %v1964_v9 }
0x107c   :  { %1972 = vadd.xlane.f32.xlu0 %v1971_v11 }
0x107d   :  { %v1968_v13 = vsel %vm405_vm11, %v1966_v12, 0.0 }
0x107e   :  { %1969 = vadd.xlane.f32.xlu1 %v1968_v13 }
0x1105   :  { %v1973_v18 = vpop.xlane.xlu0 %1972 }
0x1106   :  { %v1975_v20 = vmul.f32 0.03125, %v1973_v18 }
0x1107   :  { %v1970_v22 = vpop.xlane.xlu1 %1969 }
0x1108   :  { %v1977_v24 = vadd.f32 1e-12, %v1975_v20  ;;  %v1974_v23 = vmul.f32 0.03125, %v1970_v22 }
0x110a   :  { %4441 = vrsqrt.f32 %v1977_v24  ;;  %v1976_v25 = vadd.f32 1e-12, %v1974_v23 }
0x110c   :  { %4443 = vrsqrt.f32 %v1976_v25 }
0x1117   :  { %v4442_v27 = vpop.eup %4441 }
0x1118   :  { %v1981_v29 = vmul.f32 %v4442_v27, %v1965_v7 }
0x1119   :  { %v4444_v31 = vpop.eup %4443 }
0x111a   :  { %v1980_v32 = vmul.f32 %v4444_v31, %v1964_v9  ;;  %v1989_v34 = vmul.f32 %v3818_v28, %v1981_v29  ;;  %v3828_v9 = vld [vmem:[%s5277_s11 + $0x20] sm:$0xff] }
0x111c   :  { %v1988_v36 = vmul.f32 %v3818_v28, %v1980_v32  ;;  %v5015_v38 = vadd.f32 %v3819_v35, %v1989_v34 }
0x111e   :  { %v5013_v37 = vadd.f32 %v3819_v35, %v1988_v36 }
0x1120   :  { %4250 = vmatprep.mubr.msk.f32.mxu1 %vm405_vm11, %v5013_v37 }
0x1121   :  { %4251 = vmatmul.mubr.msk.f32.vlgmr.msra.gmra.mxu1 %vm405_vm11, %v5015_v38 }
0x11e1   :  { %v4252_v40 = vpop.f32.mrf.mxu1 }
0x11e2   :  { %v5024_v26 = vadd.f32 %v4252_v40, %v3825_v39 }
0x11e3   :  { %v2083_v41 = vpop.f32.mrf.mxu1 }
0x11e4   :  { %v5026_v42 = vadd.f32 %v3825_v39, %v2083_v41  ;;  %2101 = vrot.lane.b32.xlu1 %v5024_v26, %s4519_s7  ;;  %v3829_v39 = vld [vmem:[%s5277_s11 + $0x28] sm:$0xff] }
0x11e6   :  { %2099 = vrot.lane.b32.xlu0 %v5026_v42, %s4519_s7  ;;  %4257 = vmatprep.mubr.msk.f32.mxu1 %vm553_vm12, %v5026_v42 }
0x1256   :  { %v2102_v45 = vpop.permute.xlu1 %2101 }
0x1257   :  { %4253 = vmatprep.subr.msk.mxu1 %vm553_vm12, %v2102_v45 }
0x1258   :  { %4254 = vmatpush3.xpose.msk.msra.mxu1 %vm553_vm12, %v2102_v45  ;;  %v2100_v46 = vpop.permute.xlu0 %2099 }
0x1259   :  { %4255 = vmatprep.subr.msk.mxu1 %vm553_vm12, %v2100_v46 }
0x125c   :  { %4256 = vmatpush3.xpose.msk.msra.mxu1 %vm553_vm12, %v2100_v46 }
0x125f   :  { %4258 = vmatmul.mubr.msk.f32.vlgmr.msra.gmra.mxu1 %vm553_vm12, %v5024_v26 }
0x131f   :  { %v4259_v47 = vpop.f32.mrf.mxu1 }
0x1320   :  { %v2187_v48 = vmul.f32 0.35355338, %v4259_v47 }
0x1321   :  { %v2177_v49 = vpop.f32.mrf.mxu1 }
0x1322   :  { %v2186_v50 = vmul.f32 0.35355338, %v2177_v49  ;;  %v2189_v51 = vadd.f32 %v2187_v48, %v4801_v30 }
0x1324   :  { %v2193_v52 = vsel %vm641_vm13, %v2189_v51, -inf  ;;  %v2188_v53 = vadd.f32 %v2186_v50, %v4806_v33 }
0x1325   :  { %2194 = vmax.xlane.f32.xlu0 %v2193_v52 }
0x1326   :  { %v2190_v54 = vsel %vm641_vm13, %v2188_v53, -inf }
0x1327   :  { %2191 = vmax.xlane.f32.xlu1 %v2190_v54 }
0x1338   :  { %2214 = vrot.lane.b32.xlu1 %v5024_v26, %s4520_s4 }
0x133c   :  { %2305 = vrot.lane.b32.xlu1 %v5024_v26, %s4521_s28 }
0x1340   :  { %2303 = vrot.lane.b32.xlu1 %v5026_v42, %s4521_s28  ;;  %s5333_s28 = smov 72  }
0x13ae   :  { %v2195_v55 = vpop.xlane.xlu0 %2194 }
0x13af   :  { %v2197_v56 = vsub.f32 %v2189_v51, %v2195_v55 }
0x13b0   :  { %v2192_v43 = vpop.xlane.xlu1 %2191 }
0x13b1   :  { %v2200_v57 = vmul.f32 1.442695, %v2197_v56  ;;  %v2196_v58 = vsub.f32 %v2188_v53, %v2192_v43 }
0x13b3   :  { %4445 = vpow2.f32 %v2200_v57  ;;  %v2198_v44 = vmul.f32 1.442695, %v2196_v58 }
0x13b4   :  { %v2215_v59 = vpop.permute.xlu1 %2214 }
0x13b5   :  { %4447 = vpow2.f32 %v2198_v44  ;;  %4260 = vmatprep.subr.mxu0 %v2215_v59 }
0x13b6   :  { %4261 = vmatpush3.msra.mxu0 %v2215_v59 }
0x13b8   :  { %v2306_v0 = vpop.permute.xlu1 %2305 }
0x13bc   :  { %v2304_v1 = vpop.permute.xlu1 %2303 }
0x13c0   :  { %v4446_v60 = vpop.eup %4445 }
0x13c1   :  { %v2205_v61 = vsel %vm641_vm13, %v4446_v60, 0.0 }
0x13c2   :  { %v4448_v62 = vpop.eup %4447  ;;  %2206 = vadd.xlane.f32.xlu0 %v2205_v61  ;;  %v4493_v61 = vld [vmem:[%s5330_s6 + $0x8] sm:$0xff] }
0x13c3   :  { %v2202_v63 = vsel %vm641_vm13, %v4448_v62, 0.0 }
0x13c4   :  { %2203 = vadd.xlane.f32.xlu1 %v2202_v63 }
0x13d5   :  { %2301 = vrot.lane.b32.xlu1 %v5024_v26, %s4522_s2 }
0x13d8   :  { %2212 = vrot.lane.b32.xlu0 %v5026_v42, %s4520_s4  ;;  %s5332_s4 = smov 112  }
0x13dc   :  { %2299 = vrot.lane.b32.xlu0 %v5026_v42, %s4522_s2  ;;  %s5334_s2 = smov 104  }
0x144b   :  { %v2207_v2 = vpop.xlane.xlu0 %2206 }
0x144c   :  { %4449 = vrcp.f32 %v2207_v2 }
0x144d   :  { %v2204_v3 = vpop.xlane.xlu1 %2203 }
0x144e   :  { %4451 = vrcp.f32 %v2204_v3 }
0x144f   :  { %v2213_v4 = vpop.permute.xlu0 %2212 }
0x1450   :  { %4262 = vmatprep.subr.mxu0 %v2213_v4 }
0x1451   :  { %4263 = vmatpush3.msra.mxu0 %v2213_v4  ;;  %v2302_v8 = vpop.permute.xlu1 %2301 }
0x1452   :  { %4267 = vmatprep.subr.msk.mxu0 %vm553_vm12, %v2306_v0 }
0x1453   :  { %v2300_v7 = vpop.permute.xlu0 %2299 }
0x1459   :  { %v4450_v5 = vpop.eup %4449 }
0x145a   :  { %v2211_v19 = vmul.f32 %v4450_v5, %v4446_v60 }
0x145b   :  { %v4452_v6 = vpop.eup %4451 }
0x145c   :  { %v2210_v21 = vmul.f32 %v4452_v6, %v4448_v62 }
0x145e   :  { %4264 = vmatprep.mubr.msk.f32.mxu0 %vm641_vm13, %v2210_v21 }
0x145f   :  { %4265 = vmatmul.mubr.msk.f32.vlgmr.msra.gmra.mxu0 %vm641_vm13, %v2211_v19 }
0x1460   :  { %4268 = vmatpush3.xpose.msk.msra.mxu0 %vm553_vm12, %v2306_v0  ;;  %4271 = vmatprep.mubr.msk.f32.mxu0 %vm553_vm12, %v2300_v7  ;;  %v4494_v0 = vld [vmem:[%s5330_s6] sm:$0xff]  ;;  %s5336_s6 = smov 40  }
0x1461   :  { %4269 = vmatprep.subr.msk.mxu0 %vm553_vm12, %v2304_v1 }
0x1464   :  { %4270 = vmatpush3.xpose.msk.msra.mxu0 %vm553_vm12, %v2304_v1 }
0x1465   :  { %4286 = vmatprep.subr.mxu0 %v3828_v9 }
0x1467   :  { %4272 = vmatmul.mubr.msk.f32.vlgmr.msra.gmra.mxu0 %vm553_vm12, %v2302_v8 }
0x1468   :  { %4287 = vmatpush3.msra.mxu0 %v3828_v9 }
0x151f   :  { %v4266_v10 = vpop.f32.mrf.mxu0 }
0x1521   :  { %v2290_v11 = vpop.f32.mrf.mxu0 }
0x1522   :  { %4288 = vmatprep.mubr.msk.f32.mxu0 %vm553_vm12, %v2290_v11 }
0x1523   :  { %4289 = vmatmul.mubr.msk.f32.vlgmr.msra.gmra.mxu0 %vm553_vm12, %v4266_v10 }
0x1527   :  { %v4273_v12 = vpop.f32.mrf.mxu0 }
0x1528   :  { %v2391_v13 = vmul.f32 0.35355338, %v4273_v12 }
0x1529   :  { %v2381_v14 = vpop.f32.mrf.mxu0 }
0x152a   :  { %v2390_v15 = vmul.f32 0.35355338, %v2381_v14  ;;  %v2393_v16 = vadd.f32 %v2391_v13, %v4801_v30 }
0x152c   :  { %v2397_v17 = vsel %vm641_vm13, %v2393_v16, -inf  ;;  %v2392_v18 = vadd.f32 %v2390_v15, %v4806_v33 }
0x152d   :  { %2398 = vmax.xlane.f32.xlu1 %v2397_v17 }
0x152e   :  { %v2394_v20 = vsel %vm641_vm13, %v2392_v18, -inf }
0x152f   :  { %2395 = vmax.xlane.f32.xlu0 %v2394_v20 }
0x153e   :  { %2418 = vrot.lane.b32.xlu1 %v5024_v26, %s4523_s0 }
0x1542   :  { %2671 = vrot.lane.b32.xlu1 %v5024_v26, %s4524_s29 }
0x1546   :  { %2669 = vrot.lane.b32.xlu1 %v5026_v42, %s4524_s29 }
0x154a   :  { %2667 = vrot.lane.b32.xlu1 %v5024_v26, %s5332_s4 }
0x154e   :  { %2956 = vrot.lane.b32.xlu1 %v5026_v42, %s5333_s28 }
0x1552   :  { %2954 = vrot.lane.b32.xlu1 %v5024_v26, %s5334_s2 }
0x15b6   :  { %v2399_v30 = vpop.xlane.xlu1 %2398 }
0x15b7   :  { %v2401_v33 = vsub.f32 %v2393_v16, %v2399_v30 }
0x15b8   :  { %v2396_v22 = vpop.xlane.xlu0 %2395 }
0x15b9   :  { %v2404_v24 = vmul.f32 1.442695, %v2401_v33  ;;  %v2400_v23 = vsub.f32 %v2392_v18, %v2396_v22 }
0x15ba   :  { %v2419_v25 = vpop.permute.xlu1 %2418 }
0x15bb   :  { %4453 = vpow2.f32 %v2404_v24  ;;  %v2402_v27 = vmul.f32 1.442695, %v2400_v23  ;;  %4274 = vmatprep.subr.mxu1 %v2419_v25 }
0x15bc   :  { %4275 = vmatpush3.msra.mxu1 %v2419_v25 }
0x15bd   :  { %4455 = vpow2.f32 %v2402_v27 }
0x15be   :  { %v2672_v47 = vpop.permute.xlu1 %2671 }
0x15c2   :  { %v2670_v50 = vpop.permute.xlu1 %2669 }
0x15c6   :  { %v2668_v53 = vpop.permute.xlu1 %2667 }
0x15c8   :  { %v4454_v28 = vpop.eup %4453 }
0x15c9   :  { %v2409_v29 = vsel %vm641_vm13, %v4454_v28, 0.0 }
0x15ca   :  { %v4456_v31 = vpop.eup %4455  ;;  %2410 = vadd.xlane.f32.xlu0 %v2409_v29  ;;  %v2957_v55 = vpop.permute.xlu1 %2956  ;;  %v3830_v29 = vld [vmem:[%s5277_s11 + $0x30] sm:$0xff] }
0x15cb   :  { %v2406_v32 = vsel %vm641_vm13, %v4456_v31, 0.0 }
0x15ce   :  { %2407 = vadd.xlane.f32.xlu0 %v2406_v32  ;;  %v2955_v56 = vpop.permute.xlu1 %2954 }
0x15e4   :  { %2416 = vrot.lane.b32.xlu0 %v5026_v42, %s4523_s0 }
0x15e8   :  { %2665 = vrot.lane.b32.xlu0 %v5026_v42, %s5332_s4 }
0x15ec   :  { %2958 = vrot.lane.b32.xlu0 %v5024_v26, %s5333_s28 }
0x15f0   :  { %2952 = vrot.lane.b32.xlu0 %v5026_v42, %s5334_s2 }
0x1653   :  { %v2411_v34 = vpop.xlane.xlu0 %2410 }
0x1654   :  { %4457 = vrcp.f32 %v2411_v34 }
0x1657   :  { %v2408_v35 = vpop.xlane.xlu0 %2407 }
0x1658   :  { %4459 = vrcp.f32 %v2408_v35 }
0x165b   :  { %v2417_v36 = vpop.permute.xlu0 %2416 }
0x165c   :  { %4276 = vmatprep.subr.mxu1 %v2417_v36 }
0x165d   :  { %4277 = vmatpush3.msra.mxu1 %v2417_v36 }
0x165e   :  { %4281 = vmatprep.subr.mxu1 %v3829_v39 }
0x165f   :  { %v2666_v48 = vpop.permute.xlu0 %2665 }
0x1661   :  { %v4458_v40 = vpop.eup %4457 }
0x1662   :  { %v2415_v46 = vmul.f32 %v4458_v40, %v4454_v28 }
0x1663   :  { %v2959_v52 = vpop.permute.xlu0 %2958 }
0x1665   :  { %v4460_v41 = vpop.eup %4459 }
0x1666   :  { %v2414_v45 = vmul.f32 %v4460_v41, %v4456_v31 }
0x1667   :  { %v2953_v54 = vpop.permute.xlu0 %2952 }
0x1668   :  { %4278 = vmatprep.mubr.msk.f32.mxu1 %vm641_vm13, %v2414_v45 }
0x1669   :  { %4279 = vmatmul.mubr.msk.f32.vlgmr.msra.gmra.mxu1 %vm641_vm13, %v2415_v46 }
0x166a   :  { %4282 = vmatpush3.msra.mxu1 %v3829_v39 }
0x166b   :  { %4291 = vmatprep.subr.msk.mxu1 %vm553_vm12, %v2672_v47 }
0x1729   :  { %v4280_v49 = vpop.f32.mrf.mxu1 }
0x172b   :  { %v2494_v51 = vpop.f32.mrf.mxu1 }
0x172c   :  { %4283 = vmatprep.mubr.msk.f32.mxu1 %vm553_vm12, %v2494_v51 }
0x172d   :  { %4284 = vmatmul.mubr.msk.f32.vlgmr.msra.gmra.mxu1 %vm553_vm12, %v4280_v49 }
0x172e   :  { %4292 = vmatpush3.xpose.msk.msra.mxu1 %vm553_vm12, %v2672_v47  ;;  %4295 = vmatprep.mubr.msk.f32.mxu1 %vm553_vm12, %v2666_v48  ;;  %v4290_v47 = vpop.f32.mrf.mxu0 }
0x172f   :  { %4293 = vmatprep.subr.msk.mxu1 %vm553_vm12, %v2670_v50 }
0x1730   :  { %v2656_v48 = vpop.f32.mrf.mxu0 }
0x1732   :  { %4294 = vmatpush3.xpose.msk.msra.mxu1 %vm553_vm12, %v2670_v50 }
0x1733   :  { %4310 = vmatprep.subr.msk.mxu1 %vm553_vm12, %v2959_v52 }
0x1735   :  { %4296 = vmatmul.mubr.msk.f32.vlgmr.msra.gmra.mxu1 %vm553_vm12, %v2668_v53 }
0x1736   :  { %4311 = vmatpush3.xpose.msk.msra.mxu1 %vm553_vm12, %v2959_v52  ;;  %4314 = vmatprep.mubr.msk.f32.mxu1 %vm553_vm12, %v2953_v54 }
0x1737   :  { %4312 = vmatprep.subr.msk.mxu1 %vm553_vm12, %v2957_v55 }
0x173a   :  { %4313 = vmatpush3.xpose.msk.msra.mxu1 %vm553_vm12, %v2957_v55 }
0x173d   :  { %4315 = vmatmul.mubr.msk.f32.vlgmr.msra.gmra.mxu1 %vm553_vm12, %v2955_v56  ;;  %v3831_v56 = vld [vmem:[%s5277_s11 + $0x38] sm:$0xff] }
0x17ed   :  { %v5116_v43 = vpop.f32.mrf.mxu1 }
0x17ef   :  { %v5118_v57 = vpop.f32.mrf.mxu1 }
0x17f5   :  { %v4297_v58 = vpop.f32.mrf.mxu1 }
0x17f6   :  { %v2757_v44 = vmul.f32 0.35355338, %v4297_v58  ;;  %v2662_v58 = vadd.f32 %v4290_v47, %v5116_v43  ;;  %v3881_v47 = vld [vmem:[%s5283_s17 + $0x58] sm:$0xff] }
0x17f7   :  { %v2747_v59 = vpop.f32.mrf.mxu1 }
0x17f8   :  { %v2756_v60 = vmul.f32 0.35355338, %v2747_v59  ;;  %v2759_v62 = vadd.f32 %v4493_v61, %v2757_v44  ;;  %v2657_v59 = vadd.f32 %v2656_v48, %v5118_v57  ;;  %v3880_v48 = vld [vmem:[%s5283_s17 + $0x50] sm:$0xff] }
0x17fa   :  { %v2763_v63 = vsel %vm641_vm13, %v2759_v62, -inf  ;;  %v2758_v1 = vadd.f32 %v4494_v0, %v2756_v60 }
0x17fb   :  { %2764 = vmax.xlane.f32.xlu1 %v2763_v63 }
0x17fc   :  { %v2760_v2 = vsel %vm641_vm13, %v2758_v1, -inf }
0x17fd   :  { %2761 = vmax.xlane.f32.xlu0 %v2760_v2  ;;  %v4316_v3 = vpop.f32.mrf.mxu1  ;;  %v3865_v2 = vld [vmem:[%s5278_s12 + $0x1] ss:$0 sm:$0xff] }
0x17fe   :  { %v3044_v30 = vmul.f32 0.35355338, %v4316_v3 }
0x17ff   :  { %v3034_v4 = vpop.f32.mrf.mxu1 }
0x1800   :  { %v3043_v5 = vmul.f32 0.35355338, %v3034_v4  ;;  %v3046_v24 = vadd.f32 %v4493_v61, %v3044_v30 }
0x1802   :  { %v3045_v6 = vadd.f32 %v4494_v0, %v3043_v5  ;;  %v3050_v23 = vsel %vm641_vm13, %v3046_v24, -inf }
0x1804   :  { %v3047_v21 = vsel %vm641_vm13, %v3045_v6, -inf }
0x180c   :  { %2784 = vrot.lane.b32.xlu1 %v5024_v26, %s5335_s3 }
0x1830   :  { %3048 = vmax.xlane.f32.xlu1 %v3047_v21 }
0x1884   :  { %v2765_v19 = vpop.xlane.xlu1 %2764 }
0x1885   :  { %v2767_v7 = vsub.f32 %v2759_v62, %v2765_v19 }
0x1886   :  { %v2762_v8 = vpop.xlane.xlu0 %2761 }
0x1887   :  { %v2770_v9 = vmul.f32 1.442695, %v2767_v7  ;;  %v2766_v10 = vsub.f32 %v2758_v1, %v2762_v8 }
0x1888   :  { %v2785_v11 = vpop.permute.xlu1 %2784 }
0x1889   :  { %4461 = vpow2.f32 %v2770_v9  ;;  %v2768_v12 = vmul.f32 1.442695, %v2766_v10  ;;  %4298 = vmatprep.subr.mxu0 %v2785_v11 }
0x188a   :  { %4299 = vmatpush3.msra.mxu0 %v2785_v11 }
0x188b   :  { %4463 = vpow2.f32 %v2768_v12 }
0x1896   :  { %v4462_v13 = vpop.eup %4461 }
0x1897   :  { %v2775_v14 = vsel %vm641_vm13, %v4462_v13, 0.0 }
0x1898   :  { %v4464_v15 = vpop.eup %4463  ;;  %2776 = vadd.xlane.f32.xlu0 %v2775_v14 }
0x1899   :  { %v2772_v16 = vsel %vm641_vm13, %v4464_v15, 0.0 }
0x189c   :  { %2773 = vadd.xlane.f32.xlu0 %v2772_v16 }
0x18b2   :  { %2782 = vrot.lane.b32.xlu0 %v5026_v42, %s5335_s3 }
0x18b9   :  { %v3049_v17 = vpop.xlane.xlu1 %3048 }
0x18ba   :  { %v3053_v18 = vsub.f32 %v3045_v6, %v3049_v17  ;;  %v3872_v17 = vld [vmem:[%s5281_s15 + $0x30] sm:$0xff] }
0x18bc   :  { %v3055_v20 = vmul.f32 1.442695, %v3053_v18  ;;  %v3871_v18 = vld [vmem:[%s5281_s15 + $0x28] sm:$0xff] }
0x18be   :  { %4465 = vpow2.f32 %v3055_v20  ;;  %v3870_v20 = vld [vmem:[%s5281_s15 + $0x20] sm:$0xff] }
0x18cb   :  { %v4466_v33 = vpop.eup %4465 }
0x18cc   :  { %v3059_v22 = vsel %vm641_vm13, %v4466_v33, 0.0 }
0x18cd   :  { %3060 = vadd.xlane.f32.xlu1 %v3059_v22 }
0x18d1   :  { %3051 = vmax.xlane.f32.xlu0 %v3050_v23 }
0x18de   :  { %3071 = vrot.lane.b32.xlu1 %v5024_v26, %s5336_s6 }
0x1921   :  { %v2777_v25 = vpop.xlane.xlu0 %2776 }
0x1922   :  { %4467 = vrcp.f32 %v2777_v25 }
0x1925   :  { %v2774_v27 = vpop.xlane.xlu0 %2773 }
0x1926   :  { %4469 = vrcp.f32 %v2774_v27 }
0x1929   :  { %v2783_v28 = vpop.permute.xlu0 %2782 }
0x192a   :  { %4300 = vmatprep.subr.mxu0 %v2783_v28 }
0x192b   :  { %4301 = vmatpush3.msra.mxu0 %v2783_v28  ;;  %v3868_v28 = vld [vmem:[%s5279_s13 + $0x1] ss:$0 sm:$0xff] }
0x192c   :  { %4305 = vmatprep.subr.mxu0 %v3830_v29 }
0x192f   :  { %v4468_v31 = vpop.eup %4467 }
0x1930   :  { %v2781_v35 = vmul.f32 %v4468_v31, %v4462_v13 }
0x1933   :  { %v4470_v32 = vpop.eup %4469 }
0x1934   :  { %v2780_v34 = vmul.f32 %v4470_v32, %v4464_v15 }
0x1936   :  { %4302 = vmatprep.mubr.msk.f32.mxu0 %vm641_vm13, %v2780_v34 }
0x1937   :  { %4303 = vmatmul.mubr.msk.f32.vlgmr.msra.gmra.mxu0 %vm641_vm13, %v2781_v35  ;;  %v3869_v35 = vld [vmem:[%s5280_s14 + $0x1] ss:$0 sm:$0xff] }
0x1938   :  { %4306 = vmatpush3.msra.mxu0 %v3830_v29 }
0x1956   :  { %v3061_v26 = vpop.xlane.xlu1 %3060 }
0x195a   :  { %v3072_v36 = vpop.permute.xlu1 %3071  ;;  %v3052_v39 = vpop.xlane.xlu0 %3051 }
0x195b   :  { %v3054_v40 = vsub.f32 %v3046_v24, %v3052_v39  ;;  %4317 = vmatprep.subr.mxu0 %v3072_v36 }
0x195d   :  { %v3057_v41 = vmul.f32 1.442695, %v3054_v40  ;;  %v3885_v40 = vld [vmem:[%s5283_s17 + $0x78] sm:$0xff] }
0x195f   :  { %4471 = vpow2.f32 %v3057_v41  ;;  %v3884_v41 = vld [vmem:[%s5283_s17 + $0x70] sm:$0xff] }
0x1960   :  { %4473 = vrcp.f32 %v3061_v26 }
0x196c   :  { %v4472_v45 = vpop.eup %4471 }
0x196d   :  { %v3062_v46 = vsel %vm641_vm13, %v4472_v45, 0.0  ;;  %v4474_v49 = vpop.eup %4473 }
0x196e   :  { %3063 = vadd.xlane.f32.xlu0 %v3062_v46  ;;  %v3067_v53 = vmul.f32 %v4474_v49, %v4466_v33  ;;  %v3882_v46 = vld [vmem:[%s5283_s17 + $0x60] sm:$0xff]  ;;  %v3879_v49 = vld [vmem:[%s5283_s17 + $0x48] sm:$0xff] }
0x1984   :  { %3069 = vrot.lane.b32.xlu0 %v5026_v42, %s5336_s6 }
0x19f7   :  { %v4304_v50 = vpop.f32.mrf.mxu0  ;;  %v3064_v51 = vpop.xlane.xlu0 %3063 }
0x19f8   :  { %4475 = vrcp.f32 %v3064_v51  ;;  %v3875_v51 = vld [vmem:[%s5282_s16 + $0x1] ss:$0 sm:$0xff] }
0x19f9   :  { %v2860_v52 = vpop.f32.mrf.mxu0 }
0x19fa   :  { %4307 = vmatprep.mubr.msk.f32.mxu0 %vm553_vm12, %v2860_v52 }
0x19fb   :  { %4308 = vmatmul.mubr.msk.f32.vlgmr.msra.gmra.mxu0 %vm553_vm12, %v4304_v50  ;;  %v3070_v54 = vpop.permute.xlu0 %3069  ;;  %v3878_v50 = vld [vmem:[%s5283_s17 + $0x40] sm:$0xff] }
0x19fc   :  { %4318 = vmatpush3.msra.mxu0 %v3072_v36  ;;  %4321 = vmatprep.mubr.msk.f32.mxu0 %vm641_vm13, %v3067_v53 }
0x19fd   :  { %4319 = vmatprep.subr.mxu0 %v3070_v54 }
0x19fe   :  { %4320 = vmatpush3.msra.mxu0 %v3070_v54 }
0x19ff   :  { %4324 = vmatprep.subr.mxu0 %v3831_v56 }
0x1a05   :  { %v4476_v42 = vpop.eup %4475 }
0x1a06   :  { %v3068_v55 = vmul.f32 %v4476_v42, %v4472_v45  ;;  %v3883_v45 = vld [vmem:[%s5283_s17 + $0x68] sm:$0xff] }
0x1a08   :  { %4322 = vmatmul.mubr.msk.f32.vlgmr.msra.gmra.mxu0 %vm641_vm13, %v3068_v55 }
0x1a09   :  { %4325 = vmatpush3.msra.mxu0 %v3831_v56 }
0x1a0a   :  { %4340 = vmatprep.subr.mxu0 %v3885_v40 }
0x1abb   :  { %v4309_v44 = vpop.f32.mrf.mxu0 }
0x1abc   :  { %v2951_v60 = vadd.f32 %v4309_v44, %v2662_v58 }
0x1abd   :  { %v2941_v61 = vpop.f32.mrf.mxu0 }
0x1abe   :  { %v2950_v62 = vadd.f32 %v2941_v61, %v2657_v59 }
0x1ac8   :  { %v4323_v63 = vpop.f32.mrf.mxu0 }
0x1aca   :  { %v3147_v0 = vpop.f32.mrf.mxu0 }
0x1acb   :  { %4326 = vmatprep.mubr.msk.f32.mxu0 %vm553_vm12, %v3147_v0 }
0x1acc   :  { %4327 = vmatmul.mubr.msk.f32.vlgmr.msra.gmra.mxu0 %vm553_vm12, %v4323_v63 }
0x1acd   :  { %4341 = vmatpush3.msra.mxu0 %v3885_v40 }
0x1ace   :  { %4342 = vmatprep.subr.mxu0 %v3884_v41 }
0x1acf   :  { %4343 = vmatpush3.msra.mxu0 %v3884_v41 }
0x1ad0   :  { %4344 = vmatprep.subr.mxu0 %v3883_v45 }
0x1ad1   :  { %4345 = vmatpush3.msra.mxu0 %v3883_v45  ;;  %v3893_v45 = vld [vmem:[%s5331_s1 + $0x1] ss:$0 sm:$0xff] }
0x1ad2   :  { %4346 = vmatprep.subr.mxu0 %v3882_v46 }
0x1ad3   :  { %4347 = vmatpush3.msra.mxu0 %v3882_v46 }
0x1ad4   :  { %4348 = vmatprep.subr.mxu0 %v3881_v47 }
0x1ad5   :  { %4349 = vmatpush3.msra.mxu0 %v3881_v47 }
0x1ad6   :  { %4350 = vmatprep.subr.mxu0 %v3880_v48 }
0x1ad7   :  { %4351 = vmatpush3.msra.mxu0 %v3880_v48 }
0x1ad8   :  { %4352 = vmatprep.subr.mxu0 %v3879_v49 }
0x1ad9   :  { %4353 = vmatpush3.msra.mxu0 %v3879_v49  ;;  %v3652_v49 = vld [vmem:[%s5289_s23 + $0x18] sm:$0xff] }
0x1ada   :  { %4354 = vmatprep.subr.mxu0 %v3878_v50 }
0x1adb   :  { %4355 = vmatpush3.msra.mxu0 %v3878_v50  ;;  %v3651_v50 = vld [vmem:[%s5289_s23 + $0x10] sm:$0xff] }
0x1b8c   :  { %v4328_v1 = vpop.f32.mrf.mxu0 }
0x1b8d   :  { %v3238_v3 = vadd.f32 %v4328_v1, %v2951_v60 }
0x1b8e   :  { %v3228_v4 = vpop.f32.mrf.mxu0 }
0x1b8f   :  { %v3248_v43 = vadd.f32 %v3865_v2, %v3238_v3  ;;  %v3237_v5 = vadd.f32 %v3228_v4, %v2950_v62 }
0x1b91   :  { %v3247_v6 = vadd.f32 %v3865_v2, %v3237_v5  ;;  %v3250_v57 = vadd.f32 %v3248_v43, %v5015_v38 }
0x1b93   :  { %v3258_v21 = vsel %vm405_vm11, %v3250_v57, 0.0  ;;  %v3249_v19 = vadd.f32 %v3247_v6, %v5013_v37  ;;  %v3873_v37 = vld [vmem:[%s5281_s15 + $0x38] sm:$0xff] }
0x1b94   :  { %3259 = vadd.xlane.f32.xlu0 %v3258_v21  ;;  %4329 = vmatprep.subr.mxu1 %v3873_v37  ;;  %v3887_v21 = vld [vmem:[%s5284_s18 + $0x1] ss:$0 sm:$0xff] }
0x1b95   :  { %v3255_v7 = vsel %vm405_vm11, %v3249_v19, 0.0  ;;  %4330 = vmatpush3.msra.mxu1 %v3873_v37 }
0x1b96   :  { %3256 = vadd.xlane.f32.xlu1 %v3255_v7  ;;  %4331 = vmatprep.subr.mxu1 %v3872_v17 }
0x1b97   :  { %4332 = vmatpush3.msra.mxu1 %v3872_v17 }
0x1b98   :  { %4333 = vmatprep.subr.mxu1 %v3871_v18 }
0x1b99   :  { %4334 = vmatpush3.msra.mxu1 %v3871_v18 }
0x1b9a   :  { %4335 = vmatprep.subr.mxu1 %v3870_v20 }
0x1b9b   :  { %4336 = vmatpush3.msra.mxu1 %v3870_v20 }
0x1c1d   :  { %v3260_v8 = vpop.xlane.xlu0 %3259 }
0x1c1e   :  { %v3262_v9 = vmul.f32 0.03125, %v3260_v8 }
0x1c1f   :  { %v3257_v10 = vpop.xlane.xlu1 %3256 }
0x1c20   :  { %v3264_v11 = vsub.f32 %v3250_v57, %v3262_v9  ;;  %v3261_v12 = vmul.f32 0.03125, %v3257_v10 }
0x1c22   :  { %v3263_v13 = vsub.f32 %v3249_v19, %v3261_v12  ;;  %v3266_v14 = vmul.f32 %v3264_v11, %v3264_v11 }
0x1c24   :  { %v3270_v15 = vsel %vm405_vm11, %v3266_v14, 0.0  ;;  %v3265_v16 = vmul.f32 %v3263_v13, %v3263_v13 }
0x1c25   :  { %3271 = vadd.xlane.f32.xlu0 %v3270_v15 }
0x1c26   :  { %v3267_v38 = vsel %vm405_vm11, %v3265_v16, 0.0 }
0x1c27   :  { %3268 = vadd.xlane.f32.xlu1 %v3267_v38 }
0x1cae   :  { %v3272_v30 = vpop.xlane.xlu0 %3271 }
0x1caf   :  { %v3274_v33 = vmul.f32 0.03125, %v3272_v30 }
0x1cb0   :  { %v3269_v22 = vpop.xlane.xlu1 %3268 }
0x1cb1   :  { %v3276_v24 = vadd.f32 1e-12, %v3274_v33  ;;  %v3273_v23 = vmul.f32 0.03125, %v3269_v22  ;;  %v3558_v22 = vld [vmem:[%s5287_s21 + $0x18] sm:$0xff] }
0x1cb2   :  { %4359 = vmatprep.subr.mxu1 %v3558_v22 }
0x1cb3   :  { %4477 = vrsqrt.f32 %v3276_v24  ;;  %v3275_v25 = vadd.f32 1e-12, %v3273_v23  ;;  %v3557_v24 = vld [vmem:[%s5287_s21 + $0x10] sm:$0xff]  ;;  %v3556_v23 = vld [vmem:[%s5287_s21 + $0x8] sm:$0xff] }
0x1cb5   :  { %4479 = vrsqrt.f32 %v3275_v25  ;;  %v3555_v25 = vld [vmem:[%s5287_s21] sm:$0xff] }
0x1cc0   :  { %v4478_v27 = vpop.eup %4477 }
0x1cc1   :  { %v3280_v29 = vmul.f32 %v4478_v27, %v3264_v11 }
0x1cc2   :  { %v4480_v31 = vpop.eup %4479 }
0x1cc3   :  { %v3279_v32 = vmul.f32 %v4480_v31, %v3263_v13  ;;  %v3288_v34 = vmul.f32 %v3868_v28, %v3280_v29 }
0x1cc5   :  { %v3287_v26 = vmul.f32 %v3868_v28, %v3279_v32  ;;  %v3296_v39 = vadd.f32 %v3869_v35, %v3288_v34 }
0x1cc7   :  { %v3295_v36 = vadd.f32 %v3869_v35, %v3287_v26  ;;  %v3892_v26 = vld [vmem:[%s5285_s19 + $0x1] ss:$0 sm:$0xff] }
0x1cc9   :  { %4337 = vmatprep.mubr.msk.f32.mxu1 %vm405_vm11, %v3295_v36 }
0x1cca   :  { %4338 = vmatmul.mubr.msk.f32.vlgmr.msra.gmra.mxu1 %vm405_vm11, %v3296_v39 }
0x1ccb   :  { %4360 = vmatpush3.msra.mxu1 %v3558_v22 }
0x1ccc   :  { %4361 = vmatprep.subr.mxu1 %v3557_v24 }
0x1ccd   :  { %4362 = vmatpush3.msra.mxu1 %v3557_v24 }
0x1cce   :  { %4363 = vmatprep.subr.mxu1 %v3556_v23 }
0x1ccf   :  { %4364 = vmatpush3.msra.mxu1 %v3556_v23 }
0x1cd0   :  { %4365 = vmatprep.subr.mxu1 %v3555_v25 }
0x1cd1   :  { %4366 = vmatpush3.msra.mxu1 %v3555_v25 }
0x1cd2   :  { %4370 = vmatprep.subr.mxu1 %v3652_v49 }
0x1d8a   :  { %v4339_v52 = vpop.f32.mrf.mxu1 }
0x1d8b   :  { %v3388_v53 = vadd.f32 %v4339_v52, %v3875_v51  ;;  %v3649_v52 = vld [vmem:[%s5289_s23] sm:$0xff] }
0x1d8c   :  { %v3382_v54 = vpop.f32.mrf.mxu1 }
0x1d8d   :  { %v3392_v42 = vmul.f32 %v3388_v53, %v3388_v53  ;;  %v3383_v55 = vadd.f32 %v3875_v51, %v3382_v54  ;;  %v3650_v51 = vld [vmem:[%s5289_s23 + $0x8] sm:$0xff] }
0x1d8f   :  { %v3394_v56 = vmul.f32 %v3392_v42, %v3388_v53  ;;  %v3391_v58 = vmul.f32 %v3383_v55, %v3383_v55 }
0x1d91   :  { %v3396_v44 = vmul.f32 0.044715, %v3394_v56  ;;  %v3393_v59 = vmul.f32 %v3391_v58, %v3383_v55 }
0x1d93   :  { %v3398_v60 = vadd.f32 %v3396_v44, %v3388_v53  ;;  %v3395_v61 = vmul.f32 0.044715, %v3393_v59  ;;  %v3897_v59 = vld [vmem:[%s5290_s24] ss:$0 sm:$0xff] }
0x1d95   :  { %v3400_v62 = vmul.f32 0.7978846, %v3398_v60  ;;  %v3397_v63 = vadd.f32 %v3395_v61, %v3383_v55 }
0x1d97   :  { %4481 = vtanh.f32 %v3400_v62  ;;  %v3399_v0 = vmul.f32 0.7978846, %v3397_v63 }
0x1d99   :  { %4483 = vtanh.f32 %v3399_v0 }
0x1da4   :  { %v4482_v1 = vpop.eup %4481 }
0x1da5   :  { %v3404_v2 = vadd.f32 1.0, %v4482_v1 }
0x1da6   :  { %v4484_v3 = vpop.eup %4483 }
0x1da7   :  { %v3403_v4 = vadd.f32 1.0, %v4484_v3  ;;  %v3406_v43 = vmul.f32 0.5, %v3404_v2 }
0x1da9   :  { %v3405_v5 = vmul.f32 0.5, %v3403_v4  ;;  %v3408_v57 = vmul.f32 %v3406_v43, %v3388_v53  ;;  %v3894_v53 = vld [vmem:[%s5288_s22] ss:$0 sm:$0xff]  ;;  %s3750_s22 = sshll.u32 %s4530_s8, 4  ;;  %s3751_s22 = int_to_ptr.vmem [resolvable:$true] %s3750_s22 }
0x1daa   :  { %s4495_s26 = scalar_lea.vmem %s3751_s22, 32  ;;  %p4500_p1 = scmp.lt.s32.totalorder %s3751_s22, %s3751_s22 }
0x1dab   :  { %v3407_v6 = vmul.f32 %v3405_v5, %v3383_v55  ;;  %p4496_p0 = scmp.ne.s32.totalorder %s3751_s22, %s4495_s26  ;;  %p4501_p2 = scmp.lt.s32.totalorder %s4495_s26, %s4495_s26 }
0x1dad   :  { %4356 = vmatprep.mubr.msk.f32.mxu0 %vm146_vm2, %v3407_v6  ;;  %p4502_p3 = por %p4501_p2, %p4500_p1 }
0x1dae   :  { %4357 = vmatmul.mubr.msk.f32.vlgmr.msra.gmra.mxu0 %vm146_vm2, %v3408_v57 }
0x1daf   :  { %p4503_p4 = pnand %p4502_p3, %p4496_p0 }
0x1e6e   :  { %v4358_v19 = vpop.f32.mrf.mxu0 }
0x1e6f   :  { %v3504_v7 = vadd.f32 %v4358_v19, %v3887_v21 }
0x1e70   :  { %v3498_v8 = vpop.f32.mrf.mxu0 }
0x1e71   :  { %v3508_v9 = vadd.f32 %v3504_v7, %v3296_v39  ;;  %v3499_v10 = vadd.f32 %v3887_v21, %v3498_v8 }
0x1e73   :  { %v3516_v11 = vsel %vm405_vm11, %v3508_v9, 0.0  ;;  %v3507_v12 = vadd.f32 %v3499_v10, %v3295_v36 }
0x1e74   :  { %3517 = vadd.xlane.f32.xlu0 %v3516_v11 }
0x1e75   :  { %v3513_v13 = vsel %vm405_vm11, %v3507_v12, 0.0 }
0x1e76   :  { %3514 = vadd.xlane.f32.xlu1 %v3513_v13 }
0x1efd   :  { %v3518_v14 = vpop.xlane.xlu0 %3517 }
0x1efe   :  { %v3520_v15 = vmul.f32 0.03125, %v3518_v14 }
0x1eff   :  { %v3515_v16 = vpop.xlane.xlu1 %3514 }
0x1f00   :  { %v3522_v38 = vsub.f32 %v3508_v9, %v3520_v15  ;;  %v3519_v37 = vmul.f32 0.03125, %v3515_v16 }
0x1f02   :  { %v3521_v17 = vsub.f32 %v3507_v12, %v3519_v37  ;;  %v3524_v18 = vmul.f32 %v3522_v38, %v3522_v38 }
0x1f04   :  { %v3528_v20 = vsel %vm405_vm11, %v3524_v18, 0.0  ;;  %v3523_v30 = vmul.f32 %v3521_v17, %v3521_v17 }
0x1f05   :  { %3529 = vadd.xlane.f32.xlu0 %v3528_v20 }
0x1f06   :  { %v3525_v33 = vsel %vm405_vm11, %v3523_v30, 0.0 }
0x1f07   :  { %3526 = vadd.xlane.f32.xlu1 %v3525_v33 }
0x1f8e   :  { %v3530_v27 = vpop.xlane.xlu0 %3529 }
0x1f8f   :  { %v3532_v28 = vmul.f32 0.03125, %v3530_v27 }
0x1f90   :  { %v3527_v29 = vpop.xlane.xlu1 %3526 }
0x1f91   :  { %v3534_v31 = vadd.f32 1e-12, %v3532_v28  ;;  %v3531_v32 = vmul.f32 0.03125, %v3527_v29 }
0x1f93   :  { %4485 = vrsqrt.f32 %v3534_v31  ;;  %v3533_v34 = vadd.f32 1e-12, %v3531_v32 }
0x1f95   :  { %4487 = vrsqrt.f32 %v3533_v34 }
0x1fa0   :  { %v4486_v35 = vpop.eup %4485 }
0x1fa1   :  { %v3538_v36 = vmul.f32 %v4486_v35, %v3522_v38 }
0x1fa2   :  { %v4488_v39 = vpop.eup %4487 }
0x1fa3   :  { %v3537_v40 = vmul.f32 %v4488_v39, %v3521_v17  ;;  %v3546_v41 = vmul.f32 %v3892_v26, %v3538_v36 }
0x1fa5   :  { %v3545_v46 = vmul.f32 %v3892_v26, %v3537_v40  ;;  %v3554_v48 = vadd.f32 %v3893_v45, %v3546_v41 }
0x1fa7   :  { %v3553_v47 = vadd.f32 %v3893_v45, %v3545_v46 }
0x1fa9   :  { %4367 = vmatprep.mubr.msk.f32.mxu1 %vm405_vm11, %v3553_v47 }
0x1faa   :  { %4368 = vmatmul.mubr.msk.f32.vlgmr.msra.gmra.mxu1 %vm405_vm11, %v3554_v48 }
0x1fab   :  { %4371 = vmatpush3.msra.mxu1 %v3652_v49 }
0x1fac   :  { %4372 = vmatprep.subr.mxu1 %v3651_v50 }
0x1fad   :  { %4373 = vmatpush3.msra.mxu1 %v3651_v50 }
0x1fae   :  { %4374 = vmatprep.subr.mxu1 %v3650_v51 }
0x1faf   :  { %4375 = vmatpush3.msra.mxu1 %v3650_v51 }
0x1fb0   :  { %4376 = vmatprep.subr.mxu1 %v3649_v52 }
0x1fb1   :  { %4377 = vmatpush3.msra.mxu1 %v3649_v52 }
0x206a   :  { %v4369_v54 = vpop.f32.mrf.mxu1 }
0x206b   :  { %v3644_v42 = vadd.f32 %v4369_v54, %v3894_v53 }
0x206c   :  { %v3638_v55 = vpop.f32.mrf.mxu1 }
0x206d   :  { %v3639_v56 = vadd.f32 %v3894_v53, %v3638_v55 }
0x206f   :  { %4489 = vtanh.f32 %v3639_v56 }
0x2070   :  { %4491 = vtanh.f32 %v3644_v42 }
0x207c   :  { %v4490_v58 = vpop.eup %4489 }
0x207d   :  { %v4492_v44 = vpop.eup %4491  ;;  %4378 = vmatprep.mubr.msk.f32.mxu1 %vm405_vm11, %v4490_v58 }
0x207e   :  { %4379 = vmatmul.mubr.msk.f32.vlgmr.msra.gmra.mxu1 %vm405_vm11, %v4492_v44 }
0x213e   :  { %v4380_v60 = vpop.f32.mrf.mxu1 }
0x213f   :  { %v3738_v61 = vadd.f32 %v4380_v60, %v3897_v59 }
0x2140   :  { %v3732_v62 = vpop.f32.mrf.mxu1 }
0x2141   :  { %3743 = vst.msk [vmem:[#allocation2 + $0x1] sm:$0x1] %vm3741_vm14, %v3738_v61  ;;  %v3733_v63 = vadd.f32 %v3897_v59, %v3732_v62 }
0x2143   :  { %3742 = vst.msk [vmem:[#allocation2] sm:$0x1] %vm3741_vm14, %v3733_v63 }
0x2144   :  { %4506 = shalt.err (!%p4503_p4)
}
0x2145   :  { %3753 = dma.vmem_to_hbm [thread:$0]  %s3751_s22, 32, %s5291_s25, [#allocation3]  }
0x2146   :  { %4515 = dma.done.wait [#allocation3], 32  }
0x2147   :  { %4516 = vsyncadd [#allocation3], 4294967264 }
0x2148   :  { %3757 = vsyncpa [#allocation3], 1 }

</bundles_post_ra>
